<compile_context>
chip_gen: v7x
topology: tpu7x:2x2x1
jax: 0.10.0
libtpu: 0.0.40
codegen_flags: <defaults>
</compile_context>

<pallas_src>
import functools
import math

import jax
import jax.numpy as jnp
from jax import lax
from jax.experimental import pallas as pl
from jax.experimental.pallas import tpu as pltpu

N_QUBITS = 4
LN_EPS = 1e-5  # PyTorch nn.LayerNorm default


def _encoder_layer_kernel(cps_ref, x_ref,
                          wqkv_ref, bqkv_ref, wo_ref, bo_ref,
                          g1_ref, be1_ref,
                          w1_ref, b1_ref, w2_ref, b2_ref,
                          g2_ref, be2_ref,
                          o_ref, *, nhead):
    S, D = x_ref.shape            # one batch per grid step (batch dim squeezed)
    dk = D // nhead

    x = x_ref[...]

    # ---- fused Q/K/V projection: one (S, D) x (D, 3D) MXU matmul ------------
    qkv = jnp.dot(x, wqkv_ref[...], preferred_element_type=jnp.float32) + bqkv_ref[...]
    q = qkv[:, :D]
    k = qkv[:, D:2 * D]
    v = qkv[:, 2 * D:]

    # ---- quantum score, vectorized over (head, seq) --------------------------
    # first N_QUBITS features of each head, min-max normalized to [0, pi]
    q4 = jnp.stack([q[:, h * dk:h * dk + N_QUBITS] for h in range(nhead)], axis=0)  # (H,S,4)
    k4 = jnp.stack([k[:, h * dk:h * dk + N_QUBITS] for h in range(nhead)], axis=0)

    def mm_norm(t):               # (H, S, N_QUBITS) -> values in [0, pi]
        tmin = jnp.min(t, axis=-1, keepdims=True)
        tmax = jnp.max(t, axis=-1, keepdims=True)
        return (t - tmin) / (tmax - tmin + 1e-8) * math.pi

    qn = mm_norm(q4)              # (H, S, 4)
    kn = mm_norm(k4)
    cqn = jnp.cos(qn)             # (H, S, 4)   query-side factors
    sqn = jnp.sin(qn)
    # key-side factor: one hoisted transpose -> (H, 4, S), S stays on lanes in
    # every wire iteration (no per-wire sublane->lane relayout).
    ckn = jnp.cos(jnp.transpose(kn, (0, 2, 1)))   # (H, 4, S)

    # analytic <Z0> of the PennyLane circuit (wire 0 cancels through the CNOTs):
    #   score[h,i,j] = prod_{w=1..3}[cos(p_w)cos(qn_w[i]) - sin(p_w)sin(qn_w[i])cos(kn_w[j])]
    # cps lives in SMEM -> cp / sp are scalar reads; 1/sqrt(dk) is pre-folded
    # into the wire-1 scalars by the wrapper.
    score = None
    for w in range(1, N_QUBITS):
        cp = cps_ref[0, w]
        sp = cps_ref[1, w]
        a = cp * cqn[:, :, w:w + 1]          # (H, S, 1)
        b = sp * sqn[:, :, w:w + 1]          # (H, S, 1)
        c = ckn[:, w:w + 1, :]               # (H, 1, S)
        term = a - b * c                     # (H, S, S)
        score = term if score is None else score * term

    # ---- softmax over keys (no mask needed: one batch per grid step) ---------
    m = jnp.max(score, axis=-1, keepdims=True)
    e = jnp.exp(score - m)
    attn = e * pl.reciprocal(jnp.sum(e, axis=-1, keepdims=True), approx=True)  # (H,S,S)

    # ---- attention output: per-head matmul, single lane-dense concat ---------
    heads = [jnp.dot(attn[h], v[:, h * dk:(h + 1) * dk],
                     preferred_element_type=jnp.float32) for h in range(nhead)]
    attn_out = jnp.concatenate(heads, axis=1)           # (S, D)

    proj = jnp.dot(attn_out, wo_ref[...],
                   preferred_element_type=jnp.float32) + bo_ref[...]

    def layer_norm(t, g, b):
        mu = jnp.mean(t, axis=-1, keepdims=True)
        var = jnp.mean((t - mu) ** 2, axis=-1, keepdims=True)
        return (t - mu) * lax.rsqrt(var + LN_EPS) * g + b

    # residual + LayerNorm 1  (dropout1 = identity)
    y = layer_norm(x + proj, g1_ref[...], be1_ref[...])

    # feed-forward: linear2(dropout(linear1(src))) -- no activation in the
    # reference module, dropout = identity
    f = jnp.dot(y, w1_ref[...], preferred_element_type=jnp.float32) + b1_ref[...]
    z = jnp.dot(f, w2_ref[...], preferred_element_type=jnp.float32) + b2_ref[...]

    # residual + LayerNorm 2  (dropout2 = identity) -- single full-block store.
    # NOTE: at D=32 the store is lane-masked (32/128 lanes); resolves itself at
    # realistic d_model >= 128.
    o_ref[...] = layer_norm(y + z, g2_ref[...], be2_ref[...])


def quantum_transformer_encoder_layer(x, params, nhead):
    B, S, D = x.shape
    dk = D // nhead
    F = params['w1'].shape[1]
    assert D % nhead == 0, "d_model must be divisible by nhead"
    assert dk >= N_QUBITS, "d_k must be >= n_qubits"

    f32 = lambda a: jnp.asarray(a, jnp.float32)
    x = f32(x)

    # glue: fuse QKV weights/biases; cos/sin of circuit params with 1/sqrt(dk)
    # folded into the wire-1 scalars (scaling one factor of the 3-term product
    # scales the whole score).
    wqkv = jnp.concatenate([f32(params['wq']), f32(params['wk']), f32(params['wv'])], axis=1)
    bqkv = jnp.concatenate([f32(params['bq']), f32(params['bk']), f32(params['bv'])], axis=1)
    cp = jnp.cos(f32(params['attn_params']))
    sp = jnp.sin(f32(params['attn_params']))
    scale = jnp.ones((N_QUBITS,), jnp.float32).at[1].set(1.0 / math.sqrt(dk))
    cps = jnp.stack([cp * scale, sp * scale]).astype(jnp.float32)        # (2, 4)

    kernel = functools.partial(_encoder_layer_kernel, nhead=nhead)

    def const_spec(shape):
        # same block for every grid step -> DMA'd once, stays VMEM-resident
        return pl.BlockSpec(shape, lambda b: (0, 0))

    in_specs = [
        pl.BlockSpec(memory_space=pltpu.MemorySpace.SMEM),    # cps (circuit scalars)
        pl.BlockSpec((None, S, D), lambda b: (b, 0, 0)),      # x: one batch per step
        const_spec((D, 3 * D)), const_spec((1, 3 * D)),       # wqkv, bqkv
        const_spec((D, D)), const_spec((1, D)),               # wo, bo
        const_spec((1, D)), const_spec((1, D)),               # g1, be1
        const_spec((D, F)), const_spec((1, F)),               # w1, b1
        const_spec((F, D)), const_spec((1, D)),               # w2, b2
        const_spec((1, D)), const_spec((1, D)),               # g2, be2
    ]

    out = pl.pallas_call(
        kernel,
        out_shape=jax.ShapeDtypeStruct((B, S, D), jnp.float32),
        grid=(B,),
        in_specs=in_specs,
        out_specs=pl.BlockSpec((None, S, D), lambda b: (b, 0, 0)),
        compiler_params=pltpu.CompilerParams(
            dimension_semantics=("parallel",),       # use both TCs on v7x
            vmem_limit_bytes=32 * 1024 * 1024,
        ),
    )(cps, x,
      wqkv, bqkv, f32(params['wo']), f32(params['bo']),
      f32(params['g1']), f32(params['be1']),
      f32(params['w1']), f32(params['b1']), f32(params['w2']), f32(params['b2']),
      f32(params['g2']), f32(params['be2']))

    return out


def reference_forward(x, p, nhead):
    """Pure-JAX reference with identical semantics (for validation)."""
    B, S, D = x.shape
    dk = D // nhead
    hp = jax.lax.Precision.HIGHEST

    def lin(a, w, b):
        return jnp.dot(a, w, precision=hp) + b

    def ln(t, g, b):
        mu = t.mean(-1, keepdims=True)
        var = ((t - mu) ** 2).mean(-1, keepdims=True)
        return (t - mu) / jnp.sqrt(var + LN_EPS) * g + b

    Q = lin(x, p['wq'], p['bq']).reshape(B, S, nhead, dk)
    K = lin(x, p['wk'], p['bk']).reshape(B, S, nhead, dk)
    V = lin(x, p['wv'], p['bv']).reshape(B, S, nhead, dk)

    q4, k4 = Q[..., :N_QUBITS], K[..., :N_QUBITS]
    qn = (q4 - q4.min(-1, keepdims=True)) / (
        q4.max(-1, keepdims=True) - q4.min(-1, keepdims=True) + 1e-8) * jnp.pi
    kn = (k4 - k4.min(-1, keepdims=True)) / (
        k4.max(-1, keepdims=True) - k4.min(-1, keepdims=True) + 1e-8) * jnp.pi

    cp = jnp.cos(p['attn_params'])
    sp = jnp.sin(p['attn_params'])
    A = cp * jnp.cos(qn)                        # [B,S,H,4]
    Bm = sp * jnp.sin(qn)                       # [B,S,H,4]
    C = jnp.cos(kn)                             # [B,S,H,4]
    e = A[:, :, None, :, :] - Bm[:, :, None, :, :] * C[:, None, :, :, :]  # [B,Si,Sj,H,4]
    score = jnp.prod(e[..., 1:], axis=-1)       # [B,Si,Sj,H]
    score = jnp.transpose(score, (0, 3, 1, 2))  # [B,H,Si,Sj]

    attn = jax.nn.softmax(score / jnp.sqrt(jnp.float32(dk)), axis=-1)
    Vt = jnp.transpose(V, (0, 2, 1, 3))         # [B,H,S,dk]
    ao = jnp.einsum('bhij,bhjd->bhid', attn, Vt, precision=hp)
    ao = jnp.transpose(ao, (0, 2, 1, 3)).reshape(B, S, D)

    y = ln(x + lin(ao, p['wo'], p['bo']), p['g1'], p['be1'])
    z = lin(lin(y, p['w1'], p['b1']), p['w2'], p['b2'])
    return ln(y + z, p['g2'], p['be2'])


if __name__ == "__main__":
    B, S, D, H, F = 2, 8, 32, 4, 64   # d_k = 8 >= n_qubits = 4

    key = jax.random.PRNGKey(0)
    ks = jax.random.split(key, 16)

    def rand(k, shape, scale=0.1):
        return (jax.random.normal(k, shape) * scale).astype(jnp.float32)

    params = dict(
        wq=rand(ks[0], (D, D)), bq=rand(ks[1], (1, D)),
        wk=rand(ks[2], (D, D)), bk=rand(ks[3], (1, D)),
        wv=rand(ks[4], (D, D)), bv=rand(ks[5], (1, D)),
        wo=rand(ks[6], (D, D)), bo=rand(ks[7], (1, D)),
        w1=rand(ks[8], (D, F)), b1=rand(ks[9], (1, F)),
        w2=rand(ks[10], (F, D)), b2=rand(ks[11], (1, D)),
        g1=jnp.ones((1, D), jnp.float32), be1=jnp.zeros((1, D), jnp.float32),
        g2=jnp.ones((1, D), jnp.float32), be2=jnp.zeros((1, D), jnp.float32),
        attn_params=rand(ks[12], (N_QUBITS,)),   # torch.randn(n_qubits) * 0.1
    )
    x = (jax.random.normal(ks[13], (B, S, D)) * 0.5).astype(jnp.float32)

    out = quantum_transformer_encoder_layer(x, params, H)
    out = jax.block_until_ready(out)

    ref = reference_forward(x, params, H)
    assert out.shape == (B, S, D)
    assert bool(jnp.all(jnp.isfinite(out)))
    max_err = float(jnp.max(jnp.abs(out - ref)))
    assert max_err < 1e-2, f"mismatch vs reference: {max_err}"

    print("KERNEL_OK")
</pallas_src>

<mosaic_0001>
module attributes {stable_mosaic.version = 11 : i64} {
  func.func @_encoder_layer_kernel(%arg0: i32, %arg1: memref<2x4xf32, #tpu.memory_space<smem>>, %arg2: memref<1x8x32xf32, #tpu.memory_space<vmem>>, %arg3: memref<32x96xf32, #tpu.memory_space<vmem>>, %arg4: memref<1x96xf32, #tpu.memory_space<vmem>>, %arg5: memref<32x32xf32, #tpu.memory_space<vmem>>, %arg6: memref<1x32xf32, #tpu.memory_space<vmem>>, %arg7: memref<1x32xf32, #tpu.memory_space<vmem>>, %arg8: memref<1x32xf32, #tpu.memory_space<vmem>>, %arg9: memref<32x64xf32, #tpu.memory_space<vmem>>, %arg10: memref<1x64xf32, #tpu.memory_space<vmem>>, %arg11: memref<64x32xf32, #tpu.memory_space<vmem>>, %arg12: memref<1x32xf32, #tpu.memory_space<vmem>>, %arg13: memref<1x32xf32, #tpu.memory_space<vmem>>, %arg14: memref<1x32xf32, #tpu.memory_space<vmem>>, %arg15: memref<1x8x32xf32, #tpu.memory_space<vmem>>) attributes {dimension_semantics = [#tpu.dimension_semantics<parallel>], iteration_bounds = array<i64: 2>, scalar_prefetch = 0 : i64, scratch_operands = 0 : i64, tpu.core_type = #tpu.core_type<tc>, window_params = [{transform_indices = @transform_0, window_bounds = array<i64: 2, 4>}, {transform_indices = @transform_1, window_bounds = array<i64: 1, 8, 32>}, {pipeline_mode = #tpu.pipeline_mode<synchronous>, transform_indices = @transform_2, window_bounds = array<i64: 32, 96>}, {pipeline_mode = #tpu.pipeline_mode<synchronous>, transform_indices = @transform_3, window_bounds = array<i64: 1, 96>}, {pipeline_mode = #tpu.pipeline_mode<synchronous>, transform_indices = @transform_4, window_bounds = array<i64: 32, 32>}, {pipeline_mode = #tpu.pipeline_mode<synchronous>, transform_indices = @transform_5, window_bounds = array<i64: 1, 32>}, {pipeline_mode = #tpu.pipeline_mode<synchronous>, transform_indices = @transform_6, window_bounds = array<i64: 1, 32>}, {pipeline_mode = #tpu.pipeline_mode<synchronous>, transform_indices = @transform_7, window_bounds = array<i64: 1, 32>}, {pipeline_mode = #tpu.pipeline_mode<synchronous>, transform_indices = @transform_8, window_bounds = array<i64: 32, 64>}, {pipeline_mode = #tpu.pipeline_mode<synchronous>, transform_indices = @transform_9, window_bounds = array<i64: 1, 64>}, {pipeline_mode = #tpu.pipeline_mode<synchronous>, transform_indices = @transform_10, window_bounds = array<i64: 64, 32>}, {pipeline_mode = #tpu.pipeline_mode<synchronous>, transform_indices = @transform_11, window_bounds = array<i64: 1, 32>}, {pipeline_mode = #tpu.pipeline_mode<synchronous>, transform_indices = @transform_12, window_bounds = array<i64: 1, 32>}, {pipeline_mode = #tpu.pipeline_mode<synchronous>, transform_indices = @transform_13, window_bounds = array<i64: 1, 32>}, {transform_indices = @transform_14, window_bounds = array<i64: 1, 8, 32>}]} {
    %c0 = arith.constant 0 : index
    %c0_0 = arith.constant 0 : index
    %c0_1 = arith.constant 0 : index
    %0 = vector.load %arg2[%c0, %c0_0, %c0_1] : memref<1x8x32xf32, #tpu.memory_space<vmem>>, vector<1x8x32xf32>
    %1 = vector.shape_cast %0 : vector<1x8x32xf32> to vector<8x32xf32>
    %c0_2 = arith.constant 0 : index
    %c0_3 = arith.constant 0 : index
    %2 = vector.load %arg3[%c0_2, %c0_3] : memref<32x96xf32, #tpu.memory_space<vmem>>, vector<32x96xf32>
    %cst = arith.constant dense<0.000000e+00> : vector<8x96xf32>
    %3 = tpu.matmul %1, %2, %cst {dimension_numbers = #tpu.dot_dimension_numbers<[1], [0], [0], [1], [0, 0, 1, 1], [], []>} : vector<8x32xf32>, vector<32x96xf32>, vector<8x96xf32> -> vector<8x96xf32>
    %c0_4 = arith.constant 0 : index
    %c0_5 = arith.constant 0 : index
    %4 = vector.load %arg4[%c0_4, %c0_5] : memref<1x96xf32, #tpu.memory_space<vmem>>, vector<1x96xf32>
    %5 = vector.broadcast %4 : vector<1x96xf32> to vector<8x96xf32>
    %6 = arith.addf %3, %5 : vector<8x96xf32>
    %7 = vector.extract_strided_slice %6 {offsets = [0, 0], sizes = [8, 32], strides = [1, 1]} : vector<8x96xf32> to vector<8x32xf32>
    %8 = vector.extract_strided_slice %6 {offsets = [0, 32], sizes = [8, 32], strides = [1, 1]} : vector<8x96xf32> to vector<8x32xf32>
    %9 = vector.extract_strided_slice %6 {offsets = [0, 64], sizes = [8, 32], strides = [1, 1]} : vector<8x96xf32> to vector<8x32xf32>
    %10 = vector.extract_strided_slice %7 {offsets = [0, 0], sizes = [8, 4], strides = [1, 1]} : vector<8x32xf32> to vector<8x4xf32>
    %11 = vector.extract_strided_slice %7 {offsets = [0, 8], sizes = [8, 4], strides = [1, 1]} : vector<8x32xf32> to vector<8x4xf32>
    %12 = vector.extract_strided_slice %7 {offsets = [0, 16], sizes = [8, 4], strides = [1, 1]} : vector<8x32xf32> to vector<8x4xf32>
    %13 = vector.extract_strided_slice %7 {offsets = [0, 24], sizes = [8, 4], strides = [1, 1]} : vector<8x32xf32> to vector<8x4xf32>
    %14 = vector.shape_cast %10 : vector<8x4xf32> to vector<1x8x4xf32>
    %15 = vector.shape_cast %11 : vector<8x4xf32> to vector<1x8x4xf32>
    %16 = vector.shape_cast %12 : vector<8x4xf32> to vector<1x8x4xf32>
    %17 = vector.shape_cast %13 : vector<8x4xf32> to vector<1x8x4xf32>
    %18 = tpu.concatenate %14, %15, %16, %17 in 0 : vector<1x8x4xf32>, vector<1x8x4xf32>, vector<1x8x4xf32>, vector<1x8x4xf32> -> vector<4x8x4xf32>
    %19 = vector.extract_strided_slice %8 {offsets = [0, 0], sizes = [8, 4], strides = [1, 1]} : vector<8x32xf32> to vector<8x4xf32>
    %20 = vector.extract_strided_slice %8 {offsets = [0, 8], sizes = [8, 4], strides = [1, 1]} : vector<8x32xf32> to vector<8x4xf32>
    %21 = vector.extract_strided_slice %8 {offsets = [0, 16], sizes = [8, 4], strides = [1, 1]} : vector<8x32xf32> to vector<8x4xf32>
    %22 = vector.extract_strided_slice %8 {offsets = [0, 24], sizes = [8, 4], strides = [1, 1]} : vector<8x32xf32> to vector<8x4xf32>
    %23 = vector.shape_cast %19 : vector<8x4xf32> to vector<1x8x4xf32>
    %24 = vector.shape_cast %20 : vector<8x4xf32> to vector<1x8x4xf32>
    %25 = vector.shape_cast %21 : vector<8x4xf32> to vector<1x8x4xf32>
    %26 = vector.shape_cast %22 : vector<8x4xf32> to vector<1x8x4xf32>
    %27 = tpu.concatenate %23, %24, %25, %26 in 0 : vector<1x8x4xf32>, vector<1x8x4xf32>, vector<1x8x4xf32>, vector<1x8x4xf32> -> vector<4x8x4xf32>
    %cst_6 = arith.constant dense<0x7F800000> : vector<4x8xf32>
    %28 = vector.multi_reduction <minimumf>, %18, %cst_6 [2] : vector<4x8x4xf32> to vector<4x8xf32>
    %29 = vector.shape_cast %28 : vector<4x8xf32> to vector<4x8x1xf32>
    %cst_7 = arith.constant dense<0xFF800000> : vector<4x8xf32>
    %30 = vector.multi_reduction <maximumf>, %18, %cst_7 [2] : vector<4x8x4xf32> to vector<4x8xf32>
    %31 = vector.shape_cast %30 : vector<4x8xf32> to vector<4x8x1xf32>
    %32 = vector.broadcast %29 : vector<4x8x1xf32> to vector<4x8x4xf32>
    %33 = arith.subf %18, %32 : vector<4x8x4xf32>
    %34 = arith.subf %31, %29 : vector<4x8x1xf32>
    %cst_8 = arith.constant 9.99999993E-9 : f32
    %35 = vector.broadcast %cst_8 : f32 to vector<4x8x1xf32>
    %36 = arith.addf %34, %35 : vector<4x8x1xf32>
    %37 = vector.broadcast %36 : vector<4x8x1xf32> to vector<4x8x4xf32>
    %38 = arith.divf %33, %37 : vector<4x8x4xf32>
    %cst_9 = arith.constant 3.14159274 : f32
    %39 = vector.broadcast %cst_9 : f32 to vector<4x8x4xf32>
    %40 = arith.mulf %38, %39 : vector<4x8x4xf32>
    %cst_10 = arith.constant dense<0x7F800000> : vector<4x8xf32>
    %41 = vector.multi_reduction <minimumf>, %27, %cst_10 [2] : vector<4x8x4xf32> to vector<4x8xf32>
    %42 = vector.shape_cast %41 : vector<4x8xf32> to vector<4x8x1xf32>
    %cst_11 = arith.constant dense<0xFF800000> : vector<4x8xf32>
    %43 = vector.multi_reduction <maximumf>, %27, %cst_11 [2] : vector<4x8x4xf32> to vector<4x8xf32>
    %44 = vector.shape_cast %43 : vector<4x8xf32> to vector<4x8x1xf32>
    %45 = vector.broadcast %42 : vector<4x8x1xf32> to vector<4x8x4xf32>
    %46 = arith.subf %27, %45 : vector<4x8x4xf32>
    %47 = arith.subf %44, %42 : vector<4x8x1xf32>
    %cst_12 = arith.constant 9.99999993E-9 : f32
    %48 = vector.broadcast %cst_12 : f32 to vector<4x8x1xf32>
    %49 = arith.addf %47, %48 : vector<4x8x1xf32>
    %50 = vector.broadcast %49 : vector<4x8x1xf32> to vector<4x8x4xf32>
    %51 = arith.divf %46, %50 : vector<4x8x4xf32>
    %cst_13 = arith.constant 3.14159274 : f32
    %52 = vector.broadcast %cst_13 : f32 to vector<4x8x4xf32>
    %53 = arith.mulf %51, %52 : vector<4x8x4xf32>
    %54 = math.cos %40 : vector<4x8x4xf32>
    %55 = math.sin %40 : vector<4x8x4xf32>
    %56 = tpu.transpose %53, [0, 2, 1] : vector<4x8x4xf32> -> vector<4x4x8xf32>
    %57 = math.cos %56 : vector<4x4x8xf32>
    %c0_14 = arith.constant 0 : index
    %c1 = arith.constant 1 : index
    %58 = memref.load %arg1[%c0_14, %c1] : memref<2x4xf32, #tpu.memory_space<smem>>
    %c1_15 = arith.constant 1 : index
    %c1_16 = arith.constant 1 : index
    %59 = memref.load %arg1[%c1_15, %c1_16] : memref<2x4xf32, #tpu.memory_space<smem>>
    %60 = vector.extract_strided_slice %54 {offsets = [0, 0, 1], sizes = [4, 8, 1], strides = [1, 1, 1]} : vector<4x8x4xf32> to vector<4x8x1xf32>
    %61 = vector.broadcast %58 : f32 to vector<4x8x1xf32>
    %62 = arith.mulf %61, %60 : vector<4x8x1xf32>
    %63 = vector.extract_strided_slice %55 {offsets = [0, 0, 1], sizes = [4, 8, 1], strides = [1, 1, 1]} : vector<4x8x4xf32> to vector<4x8x1xf32>
    %64 = vector.broadcast %59 : f32 to vector<4x8x1xf32>
    %65 = arith.mulf %64, %63 : vector<4x8x1xf32>
    %66 = vector.extract_strided_slice %57 {offsets = [0, 1, 0], sizes = [4, 1, 8], strides = [1, 1, 1]} : vector<4x4x8xf32> to vector<4x1x8xf32>
    %67 = vector.broadcast %65 : vector<4x8x1xf32> to vector<4x8x8xf32>
    %68 = vector.broadcast %66 : vector<4x1x8xf32> to vector<4x8x8xf32>
    %69 = arith.mulf %67, %68 : vector<4x8x8xf32>
    %70 = vector.broadcast %62 : vector<4x8x1xf32> to vector<4x8x8xf32>
    %71 = arith.subf %70, %69 : vector<4x8x8xf32>
    %c0_17 = arith.constant 0 : index
    %c2 = arith.constant 2 : index
    %72 = memref.load %arg1[%c0_17, %c2] : memref<2x4xf32, #tpu.memory_space<smem>>
    %c1_18 = arith.constant 1 : index
    %c2_19 = arith.constant 2 : index
    %73 = memref.load %arg1[%c1_18, %c2_19] : memref<2x4xf32, #tpu.memory_space<smem>>
    %74 = vector.extract_strided_slice %54 {offsets = [0, 0, 2], sizes = [4, 8, 1], strides = [1, 1, 1]} : vector<4x8x4xf32> to vector<4x8x1xf32>
    %75 = vector.broadcast %72 : f32 to vector<4x8x1xf32>
    %76 = arith.mulf %75, %74 : vector<4x8x1xf32>
    %77 = vector.extract_strided_slice %55 {offsets = [0, 0, 2], sizes = [4, 8, 1], strides = [1, 1, 1]} : vector<4x8x4xf32> to vector<4x8x1xf32>
    %78 = vector.broadcast %73 : f32 to vector<4x8x1xf32>
    %79 = arith.mulf %78, %77 : vector<4x8x1xf32>
    %80 = vector.extract_strided_slice %57 {offsets = [0, 2, 0], sizes = [4, 1, 8], strides = [1, 1, 1]} : vector<4x4x8xf32> to vector<4x1x8xf32>
    %81 = vector.broadcast %79 : vector<4x8x1xf32> to vector<4x8x8xf32>
    %82 = vector.broadcast %80 : vector<4x1x8xf32> to vector<4x8x8xf32>
    %83 = arith.mulf %81, %82 : vector<4x8x8xf32>
    %84 = vector.broadcast %76 : vector<4x8x1xf32> to vector<4x8x8xf32>
    %85 = arith.subf %84, %83 : vector<4x8x8xf32>
    %86 = arith.mulf %71, %85 : vector<4x8x8xf32>
    %c0_20 = arith.constant 0 : index
    %c3 = arith.constant 3 : index
    %87 = memref.load %arg1[%c0_20, %c3] : memref<2x4xf32, #tpu.memory_space<smem>>
    %c1_21 = arith.constant 1 : index
    %c3_22 = arith.constant 3 : index
    %88 = memref.load %arg1[%c1_21, %c3_22] : memref<2x4xf32, #tpu.memory_space<smem>>
    %89 = vector.extract_strided_slice %54 {offsets = [0, 0, 3], sizes = [4, 8, 1], strides = [1, 1, 1]} : vector<4x8x4xf32> to vector<4x8x1xf32>
    %90 = vector.broadcast %87 : f32 to vector<4x8x1xf32>
    %91 = arith.mulf %90, %89 : vector<4x8x1xf32>
    %92 = vector.extract_strided_slice %55 {offsets = [0, 0, 3], sizes = [4, 8, 1], strides = [1, 1, 1]} : vector<4x8x4xf32> to vector<4x8x1xf32>
    %93 = vector.broadcast %88 : f32 to vector<4x8x1xf32>
    %94 = arith.mulf %93, %92 : vector<4x8x1xf32>
    %95 = vector.extract_strided_slice %57 {offsets = [0, 3, 0], sizes = [4, 1, 8], strides = [1, 1, 1]} : vector<4x4x8xf32> to vector<4x1x8xf32>
    %96 = vector.broadcast %94 : vector<4x8x1xf32> to vector<4x8x8xf32>
    %97 = vector.broadcast %95 : vector<4x1x8xf32> to vector<4x8x8xf32>
    %98 = arith.mulf %96, %97 : vector<4x8x8xf32>
    %99 = vector.broadcast %91 : vector<4x8x1xf32> to vector<4x8x8xf32>
    %100 = arith.subf %99, %98 : vector<4x8x8xf32>
    %101 = arith.mulf %86, %100 : vector<4x8x8xf32>
    %cst_23 = arith.constant dense<0xFF800000> : vector<4x8xf32>
    %102 = vector.multi_reduction <maximumf>, %101, %cst_23 [2] : vector<4x8x8xf32> to vector<4x8xf32>
    %103 = vector.shape_cast %102 : vector<4x8xf32> to vector<4x8x1xf32>
    %104 = vector.broadcast %103 : vector<4x8x1xf32> to vector<4x8x8xf32>
    %105 = arith.subf %101, %104 : vector<4x8x8xf32>
    %106 = math.exp %105 : vector<4x8x8xf32>
    %cst_24 = arith.constant dense<0.000000e+00> : vector<4x8xf32>
    %107 = vector.multi_reduction <add>, %106, %cst_24 [2] : vector<4x8x8xf32> to vector<4x8xf32>
    %108 = vector.shape_cast %107 : vector<4x8xf32> to vector<4x8x1xf32>
    %109 = tpu.reciprocal %108 {approx = true} : vector<4x8x1xf32> -> vector<4x8x1xf32>
    %110 = vector.broadcast %109 : vector<4x8x1xf32> to vector<4x8x8xf32>
    %111 = arith.mulf %106, %110 : vector<4x8x8xf32>
    %112 = vector.extract_strided_slice %111 {offsets = [0, 0, 0], sizes = [1, 8, 8], strides = [1, 1, 1]} : vector<4x8x8xf32> to vector<1x8x8xf32>
    %113 = vector.shape_cast %112 : vector<1x8x8xf32> to vector<8x8xf32>
    %114 = vector.extract_strided_slice %9 {offsets = [0, 0], sizes = [8, 8], strides = [1, 1]} : vector<8x32xf32> to vector<8x8xf32>
    %cst_25 = arith.constant dense<0.000000e+00> : vector<8x8xf32>
    %115 = tpu.matmul %113, %114, %cst_25 {dimension_numbers = #tpu.dot_dimension_numbers<[1], [0], [0], [1], [0, 0, 1, 1], [], []>} : vector<8x8xf32>, vector<8x8xf32>, vector<8x8xf32> -> vector<8x8xf32>
    %116 = vector.extract_strided_slice %111 {offsets = [1, 0, 0], sizes = [1, 8, 8], strides = [1, 1, 1]} : vector<4x8x8xf32> to vector<1x8x8xf32>
    %117 = vector.shape_cast %116 : vector<1x8x8xf32> to vector<8x8xf32>
    %118 = vector.extract_strided_slice %9 {offsets = [0, 8], sizes = [8, 8], strides = [1, 1]} : vector<8x32xf32> to vector<8x8xf32>
    %cst_26 = arith.constant dense<0.000000e+00> : vector<8x8xf32>
    %119 = tpu.matmul %117, %118, %cst_26 {dimension_numbers = #tpu.dot_dimension_numbers<[1], [0], [0], [1], [0, 0, 1, 1], [], []>} : vector<8x8xf32>, vector<8x8xf32>, vector<8x8xf32> -> vector<8x8xf32>
    %120 = vector.extract_strided_slice %111 {offsets = [2, 0, 0], sizes = [1, 8, 8], strides = [1, 1, 1]} : vector<4x8x8xf32> to vector<1x8x8xf32>
    %121 = vector.shape_cast %120 : vector<1x8x8xf32> to vector<8x8xf32>
    %122 = vector.extract_strided_slice %9 {offsets = [0, 16], sizes = [8, 8], strides = [1, 1]} : vector<8x32xf32> to vector<8x8xf32>
    %cst_27 = arith.constant dense<0.000000e+00> : vector<8x8xf32>
    %123 = tpu.matmul %121, %122, %cst_27 {dimension_numbers = #tpu.dot_dimension_numbers<[1], [0], [0], [1], [0, 0, 1, 1], [], []>} : vector<8x8xf32>, vector<8x8xf32>, vector<8x8xf32> -> vector<8x8xf32>
    %124 = vector.extract_strided_slice %111 {offsets = [3, 0, 0], sizes = [1, 8, 8], strides = [1, 1, 1]} : vector<4x8x8xf32> to vector<1x8x8xf32>
    %125 = vector.shape_cast %124 : vector<1x8x8xf32> to vector<8x8xf32>
    %126 = vector.extract_strided_slice %9 {offsets = [0, 24], sizes = [8, 8], strides = [1, 1]} : vector<8x32xf32> to vector<8x8xf32>
    %cst_28 = arith.constant dense<0.000000e+00> : vector<8x8xf32>
    %127 = tpu.matmul %125, %126, %cst_28 {dimension_numbers = #tpu.dot_dimension_numbers<[1], [0], [0], [1], [0, 0, 1, 1], [], []>} : vector<8x8xf32>, vector<8x8xf32>, vector<8x8xf32> -> vector<8x8xf32>
    %128 = tpu.concatenate %115, %119, %123, %127 in 1 : vector<8x8xf32>, vector<8x8xf32>, vector<8x8xf32>, vector<8x8xf32> -> vector<8x32xf32>
    %c0_29 = arith.constant 0 : index
    %c0_30 = arith.constant 0 : index
    %129 = vector.load %arg5[%c0_29, %c0_30] : memref<32x32xf32, #tpu.memory_space<vmem>>, vector<32x32xf32>
    %cst_31 = arith.constant dense<0.000000e+00> : vector<8x32xf32>
    %130 = tpu.matmul %128, %129, %cst_31 {dimension_numbers = #tpu.dot_dimension_numbers<[1], [0], [0], [1], [0, 0, 1, 1], [], []>} : vector<8x32xf32>, vector<32x32xf32>, vector<8x32xf32> -> vector<8x32xf32>
    %c0_32 = arith.constant 0 : index
    %c0_33 = arith.constant 0 : index
    %131 = vector.load %arg6[%c0_32, %c0_33] : memref<1x32xf32, #tpu.memory_space<vmem>>, vector<1x32xf32>
    %132 = vector.broadcast %131 : vector<1x32xf32> to vector<8x32xf32>
    %133 = arith.addf %130, %132 : vector<8x32xf32>
    %134 = arith.addf %1, %133 : vector<8x32xf32>
    %c0_34 = arith.constant 0 : index
    %c0_35 = arith.constant 0 : index
    %135 = vector.load %arg7[%c0_34, %c0_35] : memref<1x32xf32, #tpu.memory_space<vmem>>, vector<1x32xf32>
    %c0_36 = arith.constant 0 : index
    %c0_37 = arith.constant 0 : index
    %136 = vector.load %arg8[%c0_36, %c0_37] : memref<1x32xf32, #tpu.memory_space<vmem>>, vector<1x32xf32>
    %cst_38 = arith.constant dense<0.000000e+00> : vector<8xf32>
    %137 = vector.multi_reduction <add>, %134, %cst_38 [1] : vector<8x32xf32> to vector<8xf32>
    %138 = vector.shape_cast %137 : vector<8xf32> to vector<8x1xf32>
    %cst_39 = arith.constant 3.200000e+01 : f32
    %139 = vector.broadcast %cst_39 : f32 to vector<8x1xf32>
    %140 = arith.divf %138, %139 : vector<8x1xf32>
    %141 = vector.broadcast %140 : vector<8x1xf32> to vector<8x32xf32>
    %142 = arith.subf %134, %141 : vector<8x32xf32>
    %143 = arith.mulf %142, %142 : vector<8x32xf32>
    %cst_40 = arith.constant dense<0.000000e+00> : vector<8xf32>
    %144 = vector.multi_reduction <add>, %143, %cst_40 [1] : vector<8x32xf32> to vector<8xf32>
    %145 = vector.shape_cast %144 : vector<8xf32> to vector<8x1xf32>
    %cst_41 = arith.constant 3.200000e+01 : f32
    %146 = vector.broadcast %cst_41 : f32 to vector<8x1xf32>
    %147 = arith.divf %145, %146 : vector<8x1xf32>
    %148 = vector.broadcast %140 : vector<8x1xf32> to vector<8x32xf32>
    %149 = arith.subf %134, %148 : vector<8x32xf32>
    %cst_42 = arith.constant 9.99999974E-6 : f32
    %150 = vector.broadcast %cst_42 : f32 to vector<8x1xf32>
    %151 = arith.addf %147, %150 : vector<8x1xf32>
    %152 = math.rsqrt %151 : vector<8x1xf32>
    %153 = vector.broadcast %152 : vector<8x1xf32> to vector<8x32xf32>
    %154 = arith.mulf %149, %153 : vector<8x32xf32>
    %155 = vector.broadcast %135 : vector<1x32xf32> to vector<8x32xf32>
    %156 = arith.mulf %154, %155 : vector<8x32xf32>
    %157 = vector.broadcast %136 : vector<1x32xf32> to vector<8x32xf32>
    %158 = arith.addf %156, %157 : vector<8x32xf32>
    %c0_43 = arith.constant 0 : index
    %c0_44 = arith.constant 0 : index
    %159 = vector.load %arg9[%c0_43, %c0_44] : memref<32x64xf32, #tpu.memory_space<vmem>>, vector<32x64xf32>
    %cst_45 = arith.constant dense<0.000000e+00> : vector<8x64xf32>
    %160 = tpu.matmul %158, %159, %cst_45 {dimension_numbers = #tpu.dot_dimension_numbers<[1], [0], [0], [1], [0, 0, 1, 1], [], []>} : vector<8x32xf32>, vector<32x64xf32>, vector<8x64xf32> -> vector<8x64xf32>
    %c0_46 = arith.constant 0 : index
    %c0_47 = arith.constant 0 : index
    %161 = vector.load %arg10[%c0_46, %c0_47] : memref<1x64xf32, #tpu.memory_space<vmem>>, vector<1x64xf32>
    %162 = vector.broadcast %161 : vector<1x64xf32> to vector<8x64xf32>
    %163 = arith.addf %160, %162 : vector<8x64xf32>
    %c0_48 = arith.constant 0 : index
    %c0_49 = arith.constant 0 : index
    %164 = vector.load %arg11[%c0_48, %c0_49] : memref<64x32xf32, #tpu.memory_space<vmem>>, vector<64x32xf32>
    %cst_50 = arith.constant dense<0.000000e+00> : vector<8x32xf32>
    %165 = tpu.matmul %163, %164, %cst_50 {dimension_numbers = #tpu.dot_dimension_numbers<[1], [0], [0], [1], [0, 0, 1, 1], [], []>} : vector<8x64xf32>, vector<64x32xf32>, vector<8x32xf32> -> vector<8x32xf32>
    %c0_51 = arith.constant 0 : index
    %c0_52 = arith.constant 0 : index
    %166 = vector.load %arg12[%c0_51, %c0_52] : memref<1x32xf32, #tpu.memory_space<vmem>>, vector<1x32xf32>
    %167 = vector.broadcast %166 : vector<1x32xf32> to vector<8x32xf32>
    %168 = arith.addf %165, %167 : vector<8x32xf32>
    %169 = arith.addf %158, %168 : vector<8x32xf32>
    %c0_53 = arith.constant 0 : index
    %c0_54 = arith.constant 0 : index
    %170 = vector.load %arg13[%c0_53, %c0_54] : memref<1x32xf32, #tpu.memory_space<vmem>>, vector<1x32xf32>
    %c0_55 = arith.constant 0 : index
    %c0_56 = arith.constant 0 : index
    %171 = vector.load %arg14[%c0_55, %c0_56] : memref<1x32xf32, #tpu.memory_space<vmem>>, vector<1x32xf32>
    %cst_57 = arith.constant dense<0.000000e+00> : vector<8xf32>
    %172 = vector.multi_reduction <add>, %169, %cst_57 [1] : vector<8x32xf32> to vector<8xf32>
    %173 = vector.shape_cast %172 : vector<8xf32> to vector<8x1xf32>
    %cst_58 = arith.constant 3.200000e+01 : f32
    %174 = vector.broadcast %cst_58 : f32 to vector<8x1xf32>
    %175 = arith.divf %173, %174 : vector<8x1xf32>
    %176 = vector.broadcast %175 : vector<8x1xf32> to vector<8x32xf32>
    %177 = arith.subf %169, %176 : vector<8x32xf32>
    %178 = arith.mulf %177, %177 : vector<8x32xf32>
    %cst_59 = arith.constant dense<0.000000e+00> : vector<8xf32>
    %179 = vector.multi_reduction <add>, %178, %cst_59 [1] : vector<8x32xf32> to vector<8xf32>
    %180 = vector.shape_cast %179 : vector<8xf32> to vector<8x1xf32>
    %cst_60 = arith.constant 3.200000e+01 : f32
    %181 = vector.broadcast %cst_60 : f32 to vector<8x1xf32>
    %182 = arith.divf %180, %181 : vector<8x1xf32>
    %183 = vector.broadcast %175 : vector<8x1xf32> to vector<8x32xf32>
    %184 = arith.subf %169, %183 : vector<8x32xf32>
    %cst_61 = arith.constant 9.99999974E-6 : f32
    %185 = vector.broadcast %cst_61 : f32 to vector<8x1xf32>
    %186 = arith.addf %182, %185 : vector<8x1xf32>
    %187 = math.rsqrt %186 : vector<8x1xf32>
    %188 = vector.broadcast %187 : vector<8x1xf32> to vector<8x32xf32>
    %189 = arith.mulf %184, %188 : vector<8x32xf32>
    %190 = vector.broadcast %170 : vector<1x32xf32> to vector<8x32xf32>
    %191 = arith.mulf %189, %190 : vector<8x32xf32>
    %192 = vector.broadcast %171 : vector<1x32xf32> to vector<8x32xf32>
    %193 = arith.addf %191, %192 : vector<8x32xf32>
    %c0_62 = arith.constant 0 : index
    %c0_63 = arith.constant 0 : index
    %c0_64 = arith.constant 0 : index
    %194 = vector.load %arg15[%c0_62, %c0_63, %c0_64] : memref<1x8x32xf32, #tpu.memory_space<vmem>>, vector<1x8x32xf32>
    %195 = vector.shape_cast %194 : vector<1x8x32xf32> to vector<8x32xf32>
    %196 = vector.shape_cast %193 : vector<8x32xf32> to vector<1x8x32xf32>
    tpu.vector_store %arg15[%c0_62, %c0_63, %c0_64], %196 {strides = array<i32>} : memref<1x8x32xf32, #tpu.memory_space<vmem>>, vector<1x8x32xf32>,
    return
  }
  func.func @transform_0(%arg0: i32) -> (i32, i32) {
    %c0_i32 = arith.constant 0 : i32
    %c0_i32_0 = arith.constant 0 : i32
    %c0_i32_1 = arith.constant 0 : i32
    return %c0_i32, %c0_i32_0 : i32, i32
  }
  func.func @transform_1(%arg0: i32) -> (i32, i32, i32) {
    %c0_i32 = arith.constant 0 : i32
    %c0_i32_0 = arith.constant 0 : i32
    %c0_i32_1 = arith.constant 0 : i32
    return %arg0, %c0_i32, %c0_i32_0 : i32, i32, i32
  }
  func.func @transform_2(%arg0: i32) -> (i32, i32) {
    %c0_i32 = arith.constant 0 : i32
    %c0_i32_0 = arith.constant 0 : i32
    %c0_i32_1 = arith.constant 0 : i32
    return %c0_i32, %c0_i32_0 : i32, i32
  }
  func.func @transform_3(%arg0: i32) -> (i32, i32) {
    %c0_i32 = arith.constant 0 : i32
    %c0_i32_0 = arith.constant 0 : i32
    %c0_i32_1 = arith.constant 0 : i32
    return %c0_i32, %c0_i32_0 : i32, i32
  }
  func.func @transform_4(%arg0: i32) -> (i32, i32) {
    %c0_i32 = arith.constant 0 : i32
    %c0_i32_0 = arith.constant 0 : i32
    %c0_i32_1 = arith.constant 0 : i32
    return %c0_i32, %c0_i32_0 : i32, i32
  }
  func.func @transform_5(%arg0: i32) -> (i32, i32) {
    %c0_i32 = arith.constant 0 : i32
    %c0_i32_0 = arith.constant 0 : i32
    %c0_i32_1 = arith.constant 0 : i32
    return %c0_i32, %c0_i32_0 : i32, i32
  }
  func.func @transform_6(%arg0: i32) -> (i32, i32) {
    %c0_i32 = arith.constant 0 : i32
    %c0_i32_0 = arith.constant 0 : i32
    %c0_i32_1 = arith.constant 0 : i32
    return %c0_i32, %c0_i32_0 : i32, i32
  }
  func.func @transform_7(%arg0: i32) -> (i32, i32) {
    %c0_i32 = arith.constant 0 : i32
    %c0_i32_0 = arith.constant 0 : i32
    %c0_i32_1 = arith.constant 0 : i32
    return %c0_i32, %c0_i32_0 : i32, i32
  }
  func.func @transform_8(%arg0: i32) -> (i32, i32) {
    %c0_i32 = arith.constant 0 : i32
    %c0_i32_0 = arith.constant 0 : i32
    %c0_i32_1 = arith.constant 0 : i32
    return %c0_i32, %c0_i32_0 : i32, i32
  }
  func.func @transform_9(%arg0: i32) -> (i32, i32) {
    %c0_i32 = arith.constant 0 : i32
    %c0_i32_0 = arith.constant 0 : i32
    %c0_i32_1 = arith.constant 0 : i32
    return %c0_i32, %c0_i32_0 : i32, i32
  }
  func.func @transform_10(%arg0: i32) -> (i32, i32) {
    %c0_i32 = arith.constant 0 : i32
    %c0_i32_0 = arith.constant 0 : i32
    %c0_i32_1 = arith.constant 0 : i32
    return %c0_i32, %c0_i32_0 : i32, i32
  }
  func.func @transform_11(%arg0: i32) -> (i32, i32) {
    %c0_i32 = arith.constant 0 : i32
    %c0_i32_0 = arith.constant 0 : i32
    %c0_i32_1 = arith.constant 0 : i32
    return %c0_i32, %c0_i32_0 : i32, i32
  }
  func.func @transform_12(%arg0: i32) -> (i32, i32) {
    %c0_i32 = arith.constant 0 : i32
    %c0_i32_0 = arith.constant 0 : i32
    %c0_i32_1 = arith.constant 0 : i32
    return %c0_i32, %c0_i32_0 : i32, i32
  }
  func.func @transform_13(%arg0: i32) -> (i32, i32) {
    %c0_i32 = arith.constant 0 : i32
    %c0_i32_0 = arith.constant 0 : i32
    %c0_i32_1 = arith.constant 0 : i32
    return %c0_i32, %c0_i32_0 : i32, i32
  }
  func.func @transform_14(%arg0: i32) -> (i32, i32, i32) {
    %c0_i32 = arith.constant 0 : i32
    %c0_i32_0 = arith.constant 0 : i32
    %c0_i32_1 = arith.constant 0 : i32
    return %arg0, %c0_i32, %c0_i32_0 : i32, i32, i32
  }
}

</mosaic_0001>

<bundles_post_ra>
// kernel: tpu_custom_call.1
= control target key start
LH: loop header
LB: loop body
LE: loop exit
PB: predicated region body
PF: predicated region fallthrough
CT: control target
= control target key end

     0   :  { %s4863_s0 = inlined_call_operand.hbm [shape: f32[2,4], index: 0, kind: input, shape index: {}]   ;;  %s4864_s1 = inlined_call_operand.hbm [shape: f32[2,8,32], index: 1, kind: input, shape index: {}]   ;;  %s4865_s2 = inlined_call_operand.vmem [shape: f32[32,96], index: 2, kind: input, shape index: {}]   ;;  %s4866_s3 = inlined_call_operand.vmem [shape: f32[1,96], index: 3, kind: input, shape index: {}]   ;;  %s4867_s4 = inlined_call_operand.vmem [shape: f32[32,32], index: 4, kind: input, shape index: {}]   ;;  %s4868_s5 = inlined_call_operand.vmem [shape: f32[1,32], index: 5, kind: input, shape index: {}]   ;;  %s4869_s6 = inlined_call_operand.vmem [shape: f32[1,32], index: 6, kind: input, shape index: {}]   ;;  %s4870_s7 = inlined_call_operand.vmem [shape: f32[1,32], index: 7, kind: input, shape index: {}]   ;;  %s4871_s8 = inlined_call_operand.vmem [shape: f32[32,64], index: 8, kind: input, shape index: {}]   ;;  %s4872_s9 = inlined_call_operand.vmem [shape: f32[1,64], index: 9, kind: input, shape index: {}]   ;;  %s4873_s10 = inlined_call_operand.vmem [shape: f32[64,32], index: 10, kind: input, shape index: {}]   ;;  %s4874_s11 = inlined_call_operand.vmem [shape: f32[1,32], index: 11, kind: input, shape index: {}]   ;;  %s4875_s12 = inlined_call_operand.vmem [shape: f32[1,32], index: 12, kind: input, shape index: {}]   ;;  %s4876_s13 = inlined_call_operand.vmem [shape: f32[1,32], index: 13, kind: input, shape index: {}]   ;;  %s4877_s14 = inlined_call_operand.hbm [shape: f32[2,8,32], index: 14, kind: output, shape index: {}]  }
   0x1   :  { %4886 = sst [smem:[#allocation14_spill]] %s4863_s0 }
   0x2   :  { %4887 = sst [smem:[#allocation15_spill]] %s4864_s1 }
   0x3   :  { %4888 = sst [smem:[#allocation16_spill]] %s4876_s13 }
   0x4   :  { %4889 = sst [smem:[#allocation17_spill]] %s4877_s14 }
   0x5   :  { %19 = vsyncpa [#allocation5], 0 }
   0x6   :  { %20 = vsyncpa [#allocation3], 0 }
   0x7   :  { %22 = vsyncpa [#allocation3 + $0x1], 0 }
   0x8   :  { %23 = vsyncpa [#allocation4], 0 }
   0x9   :  { %25 = vsyncpa [#allocation4 + $0x1], 0  ;;  %s3720_s29 = smov 0   ;;  %s3722_s30 = smov 0  }
   0xa   :  { %s3724_s15 = smov 0   ;;  %s3726_s16 = smov 0  }
   0xb LB: > { %4890 = sst [smem:[#allocation11_spill]] %s3605_s29  ;;  %s3741_s17 = sadd.s32 4294967295, %s3617_s16   ;;  %s3617_s16 = sphi %s3726_s16, %s4927_s16   ;;  %s3613_s15 = sphi %s3724_s15, %s4931_s15   ;;  %s3609_s30 = sphi %s3722_s30, %s4930_s30   ;;  %s3605_s29 = sphi %s3720_s29, %s4929_s29  }
   0xc   : > { %s3090_s18 = sadd.s32 4294967294, %s3617_s16   ;;  %p72_p0 = scmp.ne.s32.totalorder %s3609_s30, %s3605_s29 }
   0xd   : > { %p4882_p1 = scmp.eq.s32.totalorder %s3741_s17, 0  ;;  %p354_p3 = scmp.eq.s32.totalorder %s3090_s18, 1 }
   0xe   : > { %p3091_p5 = scmp.ge.s32.totalorder %s3617_s16, 1  ;;  %p361_p7 = scmp.lt.s32.totalorder %s3617_s16, 3 }
   0xf   : > { %p3750_p4 = por %p4882_p1, %p72_p0  ;;  %p3755_p6 = por %p354_p3, %p72_p0 }
  0x10   : > { %p3760_p8 = pnand %p3091_p5, %p361_p7  ;;  %s3766_s22 = sadd.s32 1, %s3617_s16  }
  0x11   : > { %s4891_s19 = scalar_select %p3750_p4, 1, 0 }
  0x12   : > { %s4892_s20 = scalar_select %p3755_p6, 1, 0 }
  0x13   : > { %4895 = sst [smem:[#allocation13_spill]] %s3766_s22  ;;  %p3348_p10 = pneg %p3760_p8 }
  0x14   : > { %4893 = sst [smem:[#allocation12_spill]] %s4892_s20  ;;  %s56_s23 = ssub.s32 %s3617_s16, %s3766_s22 }
  0x15   : > { %s59_s24 = sadd.s32 1, %s3613_s15  ;;  %p3775_p11 = pnand %p3348_p10, %p4882_p1 }
  0x16   : > { %p3779_p12 = scmp.eq.s32.totalorder %s56_s23, 0  ;;  %p66_p13 = scmp.ne.s32.totalorder %s3613_s15, %s3609_s30 }
  0x17   : > { %p67_p0 = scmp.eq.s32.totalorder %s3617_s16, 0  ;;  %p3361_p3 = scmp.lt.s32.totalorder %s3617_s16, 2 }
  0x18   : > { %s4898_s0 = sld [smem:[#allocation14_spill]]  ;;  %p3506_p7 = pneg %p3775_p11 }
  0x1e   : > { %s3504_s18 = scalar_lea.hbm %s4898_s0, 32 }
  0x1f   : > { %p3505_p5 = scmp.ne.s32.totalorder %s4898_s0, %s3504_s18  ;;  %p3511_p1 = scmp.lt.u32.totalorder %s3504_s18, %s4898_s0 }
  0x21   : > { %p3507_p10 = pnand %p3506_p7, %p3505_p5 }
  0x23   : > { %p3508_p9 = pneg %p3507_p10 }
  0x25   : > { %p3513_p2 = pnand %p3511_p1, %p3508_p9 }
  0x27   : > { %3516 = shalt.err (!%p3513_p2)
}
  0x28   : > { %s3619_s14 = smov [#allocation2]   ;;  %p68_p1 = por %p67_p0, %p66_p13 }
  0x29   : > { %3351 = dma.hbm_to_smem (!%p3775_p11), %s4898_s0, 32, %s3619_s14, [#allocation5]  }
  0x2a   : > { %s3806_s29 = scalar_select %p3779_p12, %s3613_s15, %s59_s24  }
  0x2b   : > { %p4899_p2 = scmp.eq.s32.totalorder %s3741_s17, 1  ;;  %s419_s20 = sand.u32 1, %s3613_s15  }
  0x2c   : > { %s3095_s22 = sshll.u32 %s3617_s16, 7  ;;  %s3094_s25 = sshll.u32 %s419_s20, 3 }
  0x2d   : > { %p3818_p9 = por %p4899_p2, %p66_p13  ;;  %s4901_s1 = sld [smem:[#allocation15_spill]] }
  0x2e   : > { %s423_s14 = scalar_lea.vmem [#allocation6], %s3094_s25  ;;  %p3831_p11 = pnand %p3361_p3, %p68_p1 }
  0x2f   : > { %s4900_s13 = scalar_select %p3818_p9, 1, 0 }
  0x30   : > { %s430_s24 = sshll.u32 %s423_s14, 4  ;;  %s420_s27 = scalar_lea.sflag [#allocation3], %s419_s20  ;;  %s3835_s24 = int_to_ptr.vmem [resolvable:$true] %s430_s24 }
  0x31   : > { %p3519_p13 = pneg %p3831_p11 }
  0x33   : > { %s3827_s23 = scalar_lea.hbm %s4901_s1, %s3095_s22  ;;  %s3522_s28 = scalar_lea.hbm %s4901_s1, 256 }
  0x34   : > { %s3517_s0 = scalar_lea.hbm %s3827_s23, 128  ;;  %p3523_p3 = scmp.lt.u32.totalorder %s3827_s23, %s4901_s1 }
  0x35   : > { %p3518_p12 = scmp.ne.s32.totalorder %s3827_s23, %s3517_s0  ;;  %p3524_p7 = scmp.lt.u32.totalorder %s3522_s28, %s3517_s0 }
  0x36   : > { %p3526_p1 = scmp.lt.u32.totalorder %s3517_s0, %s3827_s23 }
  0x37   : > { %p3520_p0 = pnand %p3519_p13, %p3518_p12  ;;  %p3525_p10 = por %p3524_p7, %p3523_p3 }
  0x39   : > { %p3521_p5 = pneg %p3520_p0  ;;  %p3527_p2 = por %p3526_p1, %p3525_p10 }
  0x3b   : > { %p3528_p6 = pnand %p3527_p2, %p3521_p5 }
  0x3d   : > { %3531 = shalt.err (!%p3528_p6)
}
  0x3e   : > { %s3532_s20 = scalar_lea.vmem %s3835_s24, 128  ;;  %s3620_s22 = smov [#allocation6]  }
  0x3f   : > { %p3533_p12 = scmp.ne.s32.totalorder %s3835_s24, %s3532_s20  ;;  %s3537_s25 = sshll.u32 %s3620_s22, 4  ;;  %s3538_s25 = int_to_ptr.vmem [resolvable:$false] %s3537_s25 }
  0x40   : > { %s3539_s18 = scalar_lea.vmem %s3538_s25, 256  ;;  %p3540_p4 = scmp.lt.s32.totalorder %s3835_s24, %s3538_s25 }
  0x41   : > { %p3535_p0 = pnand %p3533_p12, %p3519_p13  ;;  %p3541_p3 = scmp.lt.s32.totalorder %s3539_s18, %s3532_s20 }
  0x43   : > { %p3536_p9 = pneg %p3535_p0  ;;  %p3542_p7 = por %p3541_p3, %p3540_p4 }
  0x45   : > { %p3543_p10 = pnand %p3542_p7, %p3536_p9 }
  0x47   : > { %3546 = shalt.err (!%p3543_p10)
}
  0x48   : > { %3355 = dma.hbm_to_vmem [thread:$0]  (!%p3831_p11), %s3827_s23, 128, %s3835_s24, %s420_s27  }
  0x49   : > { %439 = sbr.rel (%p3760_p8) target bundleno = 3006 (0xbbe), region = 76  ;;  %p4903_p6 = scmp.eq.s32.totalorder (!%p3760_p8), %s3741_s17, 0 }
  0x50   : > { %3592 = dma.done.wait (%p4903_p6), [#allocation5], 32   ;;  %p4904_p13 = pmov %p4903_p6 }
  0x51   : > { %s3869_s0 = sand.u32 1, %s3609_s30   ;;  %p4905_p4 = scmp.ne.s32.totalorder %s4891_s19, 0 }
  0x52   : > { %3594 = vsyncadd (%p4904_p13), [#allocation5], 4294967264  ;;  %s3098_s26 = sshll.u32 %s3869_s0, 3  ;;  %s446_s28 = scalar_lea.sflag [#allocation3], %s3869_s0 }
  0x53   : > { %s3875_s23 = scalar_lea.vmem [#allocation6], %s3098_s26 }
  0x54   : > { %3596 = dma.done.wait (%p4905_p4), %s446_s28, 128  }
  0x55   : > { %3598 = vsyncadd (%p4905_p4), %s446_s28, 4294967168 }
  0x56   : > { %454 = sfence }
  0x57   : > { %v496_v0 = vld [vmem:[%s4865_s2] sm:$0xff]  ;;  %v497_v1 = vld [vmem:[%s4865_s2 + $0x8] sm:$0xff]  ;;  %v498_v2 = vld [vmem:[%s4865_s2 + $0x10] sm:$0xff]  ;;  %v3621_v3 = vmov 0.0|0.0   ;;  %vm3622_vm0 = vmmov 0   ;;  %v3623_v6 = vmov 0.0  }
  0x58   : > { %3278 = vmatprep.subr.bf16.mxu0 %v3621_v3  ;;  %v3279_v4 = vpack.c.bf16 %v497_v1, %v496_v0  ;;  %v499_v5 = vld [vmem:[%s4865_s2 + $0x18] sm:$0xff]  ;;  %3214 = vmatprep.mubr.msk.f32.mxu0 %vm3622_vm0, %v3623_v6  ;;  %v495_v8 = vld [vmem:[%s3875_s23] sm:$0xff]  ;;  %vm507_vm1 = vcmask 261120   ;;  %s3624_s21 = smov 104   ;;  %s3625_s24 = smov 120   ;;  %vm640_vm2 = vcmask 294144  }
  0x59   : > { %3217 = vmatprep.subr.mxu1 %v3623_v6  ;;  %3219 = vmatprep.mubr.msk.f32.mxu1 %vm3622_vm0, %v3623_v6  ;;  %v3282_v7 = vpack.c.bf16 %v499_v5, %v498_v2  ;;  %v3100_v9 = vld [vmem:[%s4866_s3] ss:$0 sm:$0xff]  ;;  %s3626_s27 = smov 112   ;;  %vm591_vm3 = vcmask 31744   ;;  %s3627_s14 = smov 96  }
  0x5a   : > { %3280 = vmatpush3.bf16.msra.mxu0 %v3279_v4  ;;  %s3153_s20 = sld [smem:[#allocation2 + $0x82]]  ;;  %s3151_s22 = sld [smem:[#allocation2 + $0x81]] }
  0x5b   : > { %3281 = vmatprep.subr.bf16.mxu0 %v3621_v3  ;;  %s4207_s19 = sld [smem:[#allocation2 + $0x2]]  ;;  %s4222_s25 = sld [smem:[#allocation2 + $0x1]] }
  0x5c   : > { %s3155_s18 = sld [smem:[#allocation2 + $0x83]]  ;;  %p4922_p9 = scmp.ne.s32.totalorder %s4900_s13, 0 }
  0x5d   : > { %s3154_s28 = sld [smem:[#allocation2 + $0x3]] }
  0x5e   : > { %3283 = vmatpush3.bf16.msra.mxu0 %v3282_v7  ;;  %v3628_v7 = vmov 2  }
  0x5f   : > { %3232 = vmatprep.subr.mxu0 %v3623_v6  ;;  %3421 = vset.pattern.permute.xlu0 %v3628_v7 }
  0x61   : > { %3215 = vmatmul.mubr.msk.f32.vlgmr.msra.gmra.mrb[0].mxu0 %vm507_vm1, %v495_v8  ;;  %v3629_v8 = vmov 1  }
  0x62   : > { %3234 = vmatprep.mubr.msk.f32.mxu0 %vm3622_vm0, %v3623_v6  ;;  %3420 = vset.pattern.permute.xlu1 %v3629_v8 }
 0x134   : > { %v577_v10 = vpop.f32.mrb[0].mxu0 }
 0x135   : > { %v3908_v11 = vadd.f32 %v3100_v9, %v577_v10  ;;  %v3216_v12 = vpop.f32.mrb[1].mxu0 }
 0x137   : > { %588 = vrot.lane.b32.xlu1 %v3908_v11, %s3624_s21  ;;  %582 = vrot.lane.b32.xlu0 %v3908_v11, %s3625_s24  ;;  %v653_v13 = vsel %vm640_vm2, %v3908_v11, -inf  ;;  %v641_v14 = vsel %vm640_vm2, %v3908_v11, inf  ;;  %v604_v24 = vsel %vm591_vm3, %v3908_v11, -inf  ;;  %v592_v25 = vsel %vm591_vm3, %v3908_v11, inf  ;;  %s3637_s21 = smov 64   ;;  %s3638_s24 = smov 56  }
 0x13b   : > { %585 = vrot.lane.b32.xlu0 %v3908_v11, %s3626_s27  ;;  %s3639_s27 = smov 40  }
 0x15a   : > { %654 = vmax.xlane.f32.xlu0 %v653_v13 }
 0x15b   : > { %642 = vmin.xlane.f32.xlu1 %v641_v14 }
 0x1a9   : > { %v3917_v15 = vpop.permute.xlu0 %582  ;;  %v3929_v21 = vpop.permute.xlu1 %588 }
 0x1aa   : > { %v644_v16 = vsel %vm640_vm2, %v3917_v15, inf  ;;  %v656_v17 = vsel %vm640_vm2, %v3917_v15, -inf  ;;  %v650_v22 = vsel %vm640_vm2, %v3929_v21, inf  ;;  %v662_v23 = vsel %vm640_vm2, %v3929_v21, -inf }
 0x1ab   : > { %645 = vmin.xlane.f32.xlu0 %v644_v16  ;;  %657 = vmax.xlane.f32.xlu1 %v656_v17  ;;  %v607_v26 = vsel %vm591_vm3, %v3917_v15, -inf  ;;  %v595_v27 = vsel %vm591_vm3, %v3917_v15, inf  ;;  %v613_v30 = vsel %vm591_vm3, %v3929_v21, -inf  ;;  %v601_v31 = vsel %vm591_vm3, %v3929_v21, inf }
 0x1ad   : > { %v3923_v18 = vpop.permute.xlu0 %585 }
 0x1ae   : > { %v647_v19 = vsel %vm640_vm2, %v3923_v18, inf  ;;  %v659_v20 = vsel %vm640_vm2, %v3923_v18, -inf  ;;  %v610_v28 = vsel %vm591_vm3, %v3923_v18, -inf  ;;  %v598_v29 = vsel %vm591_vm3, %v3923_v18, inf }
 0x1af   : > { %648 = vmin.xlane.f32.xlu0 %v647_v19  ;;  %660 = vmax.xlane.f32.xlu1 %v659_v20 }
 0x1b3   : > { %651 = vmin.xlane.f32.xlu0 %v650_v22  ;;  %663 = vmax.xlane.f32.xlu1 %v662_v23 }
 0x1b7   : > { %605 = vmax.xlane.f32.xlu1 %v604_v24  ;;  %593 = vmin.xlane.f32.xlu0 %v592_v25 }
 0x1bb   : > { %608 = vmax.xlane.f32.xlu1 %v607_v26  ;;  %596 = vmin.xlane.f32.xlu0 %v595_v27 }
 0x1bf   : > { %611 = vmax.xlane.f32.xlu1 %v610_v28  ;;  %599 = vmin.xlane.f32.xlu0 %v598_v29 }
 0x1c3   : > { %614 = vmax.xlane.f32.xlu1 %v613_v30  ;;  %602 = vmin.xlane.f32.xlu0 %v601_v31 }
 0x1e7   : > { %v655_v32 = vpop.xlane.xlu0 %654 }
 0x1e8   : > { %v643_v33 = vpop.xlane.xlu1 %642 }
 0x1e9   : > { %v669_v34 = vsub.f32 %v655_v32, %v643_v33  ;;  %v665_v36 = vsub.f32 %v3908_v11, %v643_v33 }
 0x1eb   : > { %v673_v35 = vadd.f32 1e-08, %v669_v34 }
 0x1ed   : > { %3435 = vrcp.f32 %v673_v35 }
 0x1f7   : > { %v3436_v37 = vpop.eup %3435 }
 0x1f8   : > { %v678_v38 = vmul.f32 %v3436_v37, %v665_v36 }
 0x1fa   : > { %v685_v39 = vmul.f32 3.1415927, %v678_v38 }
 0x1fc   : > { %1521 = vrot.lane.b32.xlu0 %v685_v39, %s3627_s14 }
 0x238   : > { %v646_v40 = vpop.xlane.xlu0 %645  ;;  %v658_v41 = vpop.xlane.xlu1 %657 }
 0x239   : > { %v670_v42 = vsub.f32 %v658_v41, %v646_v40  ;;  %v666_v55 = vsub.f32 %v3917_v15, %v646_v40 }
 0x23b   : > { %v674_v43 = vadd.f32 1e-08, %v670_v42 }
 0x23c   : > { %v649_v44 = vpop.xlane.xlu0 %648  ;;  %v661_v45 = vpop.xlane.xlu1 %660 }
 0x23d   : > { %3437 = vrcp.f32 %v674_v43  ;;  %v671_v46 = vsub.f32 %v661_v45, %v649_v44  ;;  %v667_v62 = vsub.f32 %v3923_v18, %v649_v44 }
 0x23f   : > { %v675_v47 = vadd.f32 1e-08, %v671_v46 }
 0x240   : > { %v652_v48 = vpop.xlane.xlu0 %651  ;;  %v664_v49 = vpop.xlane.xlu1 %663 }
 0x241   : > { %3439 = vrcp.f32 %v675_v47  ;;  %v672_v50 = vsub.f32 %v664_v49, %v652_v48  ;;  %v668_v9 = vsub.f32 %v3929_v21, %v652_v48 }
 0x243   : > { %v676_v51 = vadd.f32 1e-08, %v672_v50 }
 0x244   : > { %v606_v52 = vpop.xlane.xlu1 %605  ;;  %v594_v53 = vpop.xlane.xlu0 %593 }
 0x245   : > { %3441 = vrcp.f32 %v676_v51  ;;  %v620_v54 = vsub.f32 %v606_v52, %v594_v53  ;;  %v616_v19 = vsub.f32 %v3908_v11, %v594_v53 }
 0x247   : > { %v3438_v56 = vpop.eup %3437  ;;  %v624_v57 = vadd.f32 1e-08, %v620_v54 }
 0x248   : > { %v609_v58 = vpop.xlane.xlu1 %608  ;;  %v597_v59 = vpop.xlane.xlu0 %596  ;;  %v3946_v60 = vmul.f32 %v3438_v56, %v666_v55 }
 0x249   : > { %3443 = vrcp.f32 %v624_v57  ;;  %v621_v61 = vsub.f32 %v609_v58, %v597_v59  ;;  %v617_v26 = vsub.f32 %v3917_v15, %v597_v59  ;;  %v3630_v57 = vmov 683565275  }
 0x24a   : > { %v3631_v59 = vmov 2475754826  }
 0x24b   : > { %v3440_v63 = vpop.eup %3439  ;;  %v625_v0 = vadd.f32 1e-08, %v621_v61 }
 0x24c   : > { %v612_v1 = vpop.xlane.xlu1 %611  ;;  %v600_v2 = vpop.xlane.xlu0 %599  ;;  %v3949_v4 = vmul.f32 %v3440_v63, %v667_v62  ;;  %v3632_v62 = vmov 2131351028  }
 0x24d   : > { %3445 = vrcp.f32 %v625_v0  ;;  %v622_v5 = vsub.f32 %v612_v1, %v600_v2  ;;  %v618_v35 = vsub.f32 %v3923_v18, %v600_v2  ;;  %v3633_v0 = vmov 2102212464  }
 0x24e   : > { %v3634_v2 = vmov 920167782  }
 0x24f   : > { %v3442_v10 = vpop.eup %3441  ;;  %v626_v12 = vadd.f32 1e-08, %v622_v5 }
 0x250   : > { %v615_v13 = vpop.xlane.xlu1 %614  ;;  %v603_v14 = vpop.xlane.xlu0 %602  ;;  %v684_v16 = vmul.f32 %v3442_v10, %v668_v9 }
 0x251   : > { %3447 = vrcp.f32 %v626_v12  ;;  %v623_v17 = vsub.f32 %v615_v13, %v603_v14  ;;  %v619_v48 = vsub.f32 %v3929_v21, %v603_v14 }
 0x252   : > { %v688_v20 = vmul.f32 3.1415927, %v684_v16  ;;  %v3635_v16 = vmov 1326507024  }
 0x253   : > { %v3444_v22 = vpop.eup %3443  ;;  %v627_v23 = vadd.f32 1e-08, %v623_v17 }
 0x254   : > { %v629_v24 = vmul.f32 %v3444_v22, %v616_v19  ;;  %1527 = vrot.lane.b32.xlu0 %v688_v20, %s3627_s14 }
 0x255   : > { %3449 = vrcp.f32 %v627_v23 }
 0x256   : > { %v3956_v25 = vmul.f32 3.1415927, %v629_v24 }
 0x257   : > { %v3446_v27 = vpop.eup %3445 }
 0x258   : > { %v689_v28 = vand.u32 2147483647, %v3956_v25  ;;  %v692_v29 = vand.u32 2139095040, %v3956_v25  ;;  %v631_v30 = vmul.f32 %v3446_v27, %v617_v26 }
 0x25a   : > { %v693_v31 = vshrl.u32 %v692_v29, 23  ;;  %v696_v32 = vand.u32 8388607, %v689_v28  ;;  %v3963_v33 = vmul.f32 3.1415927, %v631_v30 }
 0x25b   : > { %v3448_v34 = vpop.eup %3447 }
 0x25c   : > { %v3102_v36 = vadd.s32 4294967169, %v693_v31  ;;  %v792_v37 = vand.u32 2147483647, %v3963_v33  ;;  %v795_v15 = vand.u32 2139095040, %v3963_v33  ;;  %v633_v38 = vmul.f32 %v3448_v34, %v618_v35 }
 0x25d   : > { %v697_v39 = vor.u32 8388608, %v696_v32 }
 0x25e   : > { %v699_v40 = vadd.s32 1, %v3102_v36  ;;  %v799_v41 = vand.u32 8388607, %v792_v37  ;;  %v796_v42 = vshrl.u32 %v795_v15, 23  ;;  %v3970_v43 = vmul.f32 3.1415927, %v633_v38 }
 0x25f   : > { %v3450_v44 = vpop.eup %3449  ;;  %v3974_v51 = vshll.u32 %v697_v39, 8 }
 0x260   : > { %vm700_vm4 = vcmp.gt.s32.totalorder %v699_v40, 0  ;;  %v800_v45 = vor.u32 8388608, %v799_v41  ;;  %v3106_v47 = vadd.s32 4294967169, %v796_v42  ;;  %v895_v18 = vand.u32 2147483647, %v3970_v43 }
 0x261   : > { %v701_v46 = vsel %vm700_vm4, %v699_v40, 0  ;;  %v898_v54 = vand.u32 2139095040, %v3970_v43  ;;  %v635_v55 = vmul.f32 %v3450_v44, %v619_v48 }
 0x262   : > { %v702_v49 = vshrl.u32 %v701_v46, 5  ;;  %v703_v50 = vand.u32 31, %v701_v46  ;;  %v802_v52 = vadd.s32 1, %v3106_v47  ;;  %v3976_v53 = vshll.u32 %v800_v45, 8 }
 0x263   : > { %v3983_v21 = vand.u32 8388607, %v895_v18  ;;  %v899_v44 = vshrl.u32 %v898_v54, 23  ;;  %v4003_v45 = vmul.f32 3.1415927, %v635_v55 }
 0x264   : > { %v704_v56 = vsub.s32 32, %v703_v50  ;;  %v706_v58 = vshll.u32 %v3630_v57, %v703_v50  ;;  %v709_v61 = vshll.u32 %v3631_v59, %v703_v50  ;;  %v712_v63 = vshll.u32 %v3632_v62, %v703_v50 }
 0x265   : > { %v715_v1 = vshll.u32 %v3633_v0, %v703_v50  ;;  %v718_v5 = vshll.u32 %v3634_v2, %v703_v50  ;;  %vm721_vm5 = vcmp.lt.s32.totalorder %v702_v49, 1  ;;  %vm722_vm6 = vcmp.lt.s32.totalorder %v702_v49, 2 }
 0x266   : > { %v707_v9 = vshrl.u32 %v3631_v59, %v704_v56  ;;  %v710_v10 = vshrl.u32 %v3632_v62, %v704_v56  ;;  %v713_v12 = vshrl.u32 %v3633_v0, %v704_v56  ;;  %v705_v13 = vshrl.u32 %v3630_v57, %v704_v56 }
 0x267   : > { %v716_v14 = vshrl.u32 %v3634_v2, %v704_v56  ;;  %v719_v17 = vshrl.u32 %v3635_v16, %v704_v56  ;;  %vm723_vm7 = vcmp.lt.s32.totalorder %v702_v49, 3  ;;  %vm803_vm8 = vcmp.gt.s32.totalorder %v802_v52, 0 }
 0x268   : > { %v708_v19 = vor.u32 %v707_v9, %v706_v58  ;;  %v711_v20 = vor.u32 %v710_v10, %v709_v61  ;;  %v714_v22 = vor.u32 %v713_v12, %v712_v63  ;;  %vm724_vm9 = vcmp.lt.s32.totalorder %v702_v49, 4 }
 0x269   : > { %v717_v23 = vor.u32 %v716_v14, %v715_v1  ;;  %v720_v24 = vor.u32 %v719_v17, %v718_v5  ;;  %v804_v26 = vsel %vm803_vm8, %v802_v52, 0  ;;  %vm691_vm8 = vcmp.lt.s32.totalorder %v3956_v25, 0 }
 0x26a   : > { %v725_v27 = vsel %vm721_vm5, %v705_v13, %v708_v19  ;;  %v726_v29 = vsel %vm724_vm9, %v714_v22, 2102212464  ;;  %v729_v30 = vsel %vm721_vm5, %v708_v19, %v711_v20  ;;  %v733_v31 = vsel %vm721_vm5, %v711_v20, %v714_v22 }
 0x26b   : > { %v727_v32 = vsel %vm723_vm7, %v711_v20, %v726_v29  ;;  %v730_v34 = vsel %vm724_vm9, %v717_v23, 920167782  ;;  %v734_v35 = vsel %vm724_vm9, %v720_v24, 1326507024  ;;  %v805_v36 = vshrl.u32 %v804_v26, 5 }
 0x26c   : > { %v728_v15 = vsel %vm722_vm6, %v725_v27, %v727_v32  ;;  %v731_v38 = vsel %vm723_vm7, %v714_v22, %v730_v34  ;;  %v735_v39 = vsel %vm723_vm7, %v717_v23, %v734_v35  ;;  %v806_v40 = vand.u32 31, %v804_v26 }
 0x26d   : > { %v732_v41 = vsel %vm722_vm6, %v729_v30, %v731_v38  ;;  %v736_v42 = vsel %vm722_vm6, %v733_v31, %v735_v39  ;;  %v744_v52 = vmul.u32 %v3974_v51, %v728_v15  ;;  %vm824_vm10 = vcmp.lt.s32.totalorder %v805_v36, 1 }
 0x26e   : > { %v4006_v46 = vmul.u32.u64.low %v3974_v51, %v736_v42  ;;  %v4007_v47 = vmul.u32.u64.high %v3974_v51, %v736_v42, %v4006_v46  ;;  %v4010_v48 = vmul.u32.u64.low %v3974_v51, %v732_v41  ;;  %v4011_v50 = vmul.u32.u64.high %v3974_v51, %v732_v41, %v4010_v48 }
 0x26f   : > { %v807_v56 = vsub.s32 32, %v806_v40  ;;  %v809_v58 = vshll.u32 %v3630_v57, %v806_v40  ;;  %v812_v49 = vshll.u32 %v3631_v59, %v806_v40  ;;  %v815_v54 = vshll.u32 %v3632_v62, %v806_v40 }
 0x270   : > { %v818_v55 = vshll.u32 %v3633_v0, %v806_v40  ;;  %v821_v61 = vshll.u32 %v3634_v2, %v806_v40  ;;  %vm826_vm11 = vcmp.lt.s32.totalorder %v805_v36, 3  ;;  %vm746_vm12 = vc.u32 %v4007_v47, %v4010_v48 }
 0x271   : > { %v810_v63 = vshrl.u32 %v3631_v59, %v807_v56  ;;  %v813_v1 = vshrl.u32 %v3632_v62, %v807_v56  ;;  %v816_v5 = vshrl.u32 %v3633_v0, %v807_v56  ;;  %v747_v51 = vadd.s32 1, %v4011_v50 }
 0x272   : > { %v808_v9 = vshrl.u32 %v3630_v57, %v807_v56  ;;  %v819_v10 = vshrl.u32 %v3634_v2, %v807_v56  ;;  %v822_v17 = vshrl.u32 %v3635_v16, %v807_v56  ;;  %vm827_vm13 = vcmp.lt.s32.totalorder %v805_v36, 4 }
 0x273   : > { %v811_v12 = vor.u32 %v810_v63, %v809_v58  ;;  %v814_v13 = vor.u32 %v813_v1, %v812_v49  ;;  %v817_v14 = vor.u32 %v816_v5, %v815_v54  ;;  %v748_v19 = vsel %vm746_vm12, %v747_v51, %v4011_v50 }
 0x274   : > { %v820_v20 = vor.u32 %v819_v10, %v818_v55  ;;  %v3110_v22 = vadd.s32 4294967169, %v899_v44  ;;  %v749_v23 = vadd.s32 %v748_v19, %v744_v52  ;;  %v823_v24 = vor.u32 %v822_v17, %v821_v61 }
 0x275   : > { %v828_v26 = vsel %vm824_vm10, %v808_v9, %v811_v12  ;;  %v829_v27 = vsel %vm827_vm13, %v817_v14, 2102212464  ;;  %v832_v30 = vsel %vm824_vm10, %v811_v12, %v814_v13  ;;  %v836_v32 = vsel %vm824_vm10, %v814_v13, %v817_v14 }
 0x276   : > { %v830_v29 = vsel %vm826_vm11, %v814_v13, %v829_v27  ;;  %v833_v31 = vsel %vm827_vm13, %v820_v20, 920167782  ;;  %v750_v34 = vadd.s32 536870912, %v749_v23  ;;  %vm825_vm14 = vcmp.lt.s32.totalorder %v805_v36, 2 }
 0x277   : > { %v834_v35 = vsel %vm826_vm11, %v817_v14, %v833_v31  ;;  %v837_v15 = vsel %vm827_vm13, %v823_v24, 1326507024  ;;  %v831_v38 = vsel %vm825_vm14, %v828_v26, %v830_v29  ;;  %v903_v41 = vor.u32 8388608, %v3983_v21 }
 0x278   : > { %v835_v39 = vsel %vm825_vm14, %v832_v30, %v834_v35  ;;  %v838_v40 = vsel %vm826_vm11, %v820_v20, %v837_v15  ;;  %v4035_v42 = vshrl.u32 %v750_v34, 30  ;;  %v905_v58 = vadd.s32 1, %v3110_v22 }
 0x279   : > { %v839_v44 = vsel %vm825_vm14, %v836_v32, %v838_v40  ;;  %v4038_v46 = vmul.u32.u64.low %v3976_v53, %v835_v39  ;;  %v4039_v50 = vmul.u32.u64.high %v3976_v53, %v835_v39, %v4038_v46  ;;  %v998_v36 = vand.u32 2147483647, %v4003_v45 }
 0x27a   : > { %v4043_v52 = vmul.u32.u64.low %v3976_v53, %v839_v44  ;;  %v4044_v56 = vmul.u32.u64.high %v3976_v53, %v839_v44, %v4043_v52  ;;  %v752_v49 = vshll.u32 %v4035_v42, 30  ;;  %v1001_v54 = vand.u32 2139095040, %v4003_v45 }
 0x27b   : > { %v745_v21 = vadd.s32 %v4010_v48, %v4007_v47  ;;  %v847_v55 = vmul.u32 %v3976_v53, %v831_v38  ;;  %vm906_vm15 = vcmp.gt.s32.totalorder %v905_v58, 0  ;;  %v4051_v61 = vshll.u32 %v903_v41, 8 }
 0x27c   : > { %v4053_v63 = vsub.s32 %v749_v23, %v752_v49  ;;  %v850_v1 = vadd.s32 1, %v4039_v50  ;;  %v907_v5 = vsel %vm906_vm15, %v905_v58, 0  ;;  %v1002_v51 = vshrl.u32 %v1001_v54, 23 }
 0x27d   : > { %vm849_vm2 = vc.u32 %v4044_v56, %v4038_v46  ;;  %v908_v9 = vshrl.u32 %v907_v5, 5  ;;  %v909_v10 = vand.u32 31, %v907_v5  ;;  %v775_v12 = vsub.s32 4, %v4035_v42 }
 0x27e   : > { %v755_v47 = vsub.s32 0, %v4053_v63  ;;  %v851_v53 = vsel %vm849_vm2, %v850_v1, %v4039_v50  ;;  %v3114_v48 = vadd.s32 4294967169, %v1002_v51  ;;  %v4063_v13 = vand.u32 8388607, %v998_v36 }
 0x27f   : > { %v852_v14 = vadd.s32 %v851_v53, %v847_v55  ;;  %v910_v17 = vsub.s32 32, %v909_v10  ;;  %v912_v19 = vshll.u32 %v3630_v57, %v909_v10  ;;  %v915_v20 = vshll.u32 %v3631_v59, %v909_v10 }
 0x280   : > { %v3103_v22 = vmin.u32 %v755_v47, %v4053_v63  ;;  %v918_v23 = vshll.u32 %v3632_v62, %v909_v10  ;;  %v921_v24 = vshll.u32 %v3633_v0, %v909_v10  ;;  %v924_v26 = vshll.u32 %v3634_v2, %v909_v10 }
 0x281   : > { %v853_v27 = vadd.s32 536870912, %v852_v14  ;;  %v911_v29 = vshrl.u32 %v3630_v57, %v910_v17  ;;  %v913_v30 = vshrl.u32 %v3631_v59, %v910_v17  ;;  %v916_v31 = vshrl.u32 %v3632_v62, %v910_v17 }
 0x282   : > { %v757_v32 = vclz %v3103_v22  ;;  %v919_v34 = vshrl.u32 %v3633_v0, %v910_v17  ;;  %v922_v35 = vshrl.u32 %v3634_v2, %v910_v17  ;;  %v925_v15 = vshrl.u32 %v3635_v16, %v910_v17 }
 0x283   : > { %v4077_v38 = vshrl.u32 %v853_v27, 30  ;;  %v914_v39 = vor.u32 %v913_v30, %v912_v19  ;;  %v917_v40 = vor.u32 %v916_v31, %v915_v20  ;;  %vm927_vm3 = vcmp.lt.s32.totalorder %v908_v9, 1 }
 0x284   : > { %v3104_v41 = vadd.s32 4294967294, %v757_v32  ;;  %v920_v44 = vor.u32 %v919_v34, %v918_v23  ;;  %v923_v50 = vor.u32 %v922_v35, %v921_v24  ;;  %v926_v52 = vor.u32 %v925_v15, %v924_v26 }
 0x285   : > { %v855_v58 = vshll.u32 %v4077_v38, 30  ;;  %vm928_vm4 = vcmp.lt.s32.totalorder %v908_v9, 2  ;;  %vm929_vm5 = vcmp.lt.s32.totalorder %v908_v9, 3  ;;  %vm930_vm6 = vcmp.lt.s32.totalorder %v908_v9, 4 }
 0x286   : > { %vm3105_vm7 = vcmp.lt.s32.totalorder %v3104_v41, 0  ;;  %v931_v49 = vsel %vm927_vm3, %v911_v29, %v914_v39  ;;  %v932_v54 = vsel %vm930_vm6, %v920_v44, 2102212464  ;;  %v935_v55 = vsel %vm927_vm3, %v914_v39, %v917_v40 }
 0x287   : > { %v760_v1 = vsel %vm3105_vm7, 0, %v3104_v41  ;;  %v4083_v5 = vsub.s32 %v852_v14, %v855_v58  ;;  %v933_v51 = vsel %vm929_vm5, %v917_v40, %v932_v54  ;;  %v936_v10 = vsel %vm930_vm6, %v923_v50, 920167782 }
 0x288   : > { %v761_v47 = vsub.s32 32, %v760_v1  ;;  %v762_v53 = vshll.u32 %v4053_v63, %v760_v1  ;;  %v765_v17 = vsub.s32 4294967266, %v760_v1  ;;  %v934_v19 = vsel %vm928_vm4, %v931_v49, %v933_v51 }
 0x289   : > { %v858_v20 = vsub.s32 0, %v4083_v5  ;;  %v937_v22 = vsel %vm929_vm5, %v920_v44, %v936_v10  ;;  %v939_v23 = vsel %vm927_vm3, %v917_v40, %v920_v44  ;;  %v940_v24 = vsel %vm930_vm6, %v926_v52, 1326507024 }
 0x28a   : > { %v763_v14 = vshrl.u32 %v745_v21, %v761_v47  ;;  %v766_v26 = vadd.s32 127, %v765_v17  ;;  %v938_v27 = vsel %vm928_vm4, %v935_v55, %v937_v22  ;;  %v941_v29 = vsel %vm929_vm5, %v923_v50, %v940_v24 }
 0x28b   : > { %v3107_v30 = vmin.u32 %v858_v20, %v4083_v5  ;;  %v942_v63 = vsel %vm928_vm4, %v939_v23, %v941_v29  ;;  %v4098_v31 = vmul.u32.u64.low %v4051_v61, %v938_v27  ;;  %v4099_v32 = vmul.u32.u64.high %v4051_v61, %v938_v27, %v4098_v31 }
 0x28c   : > { %v764_v34 = vor.u32 %v763_v14, %v762_v53  ;;  %v767_v35 = vshll.u32 %v766_v26, 23  ;;  %v4103_v15 = vmul.u32.u64.low %v4051_v61, %v942_v63  ;;  %v4104_v39 = vmul.u32.u64.high %v4051_v61, %v942_v63, %v4103_v15 }
 0x28d   : > { %v860_v21 = vclz %v3107_v30  ;;  %v1008_v40 = vadd.s32 1, %v3114_v48  ;;  %v848_v9 = vadd.s32 %v4038_v46, %v4044_v56  ;;  %v950_v44 = vmul.u32 %v4051_v61, %v934_v19 }
 0x28e   : > { %v768_v41 = vor.u32 4788187, %v767_v35  ;;  %v1006_v50 = vor.u32 8388608, %v4063_v13  ;;  %v771_v52 = vcvt.s32.f32 %v764_v34  ;;  %v953_v49 = vadd.s32 1, %v4099_v32 }
 0x28f   : > { %v3108_v58 = vadd.s32 4294967294, %v860_v21  ;;  %vm1009_vm9 = vcmp.gt.s32.totalorder %v1008_v40, 0  ;;  %vm952_vm10 = vc.u32 %v4104_v39, %v4098_v31  ;;  %v4119_v46 = vsel %vm691_vm8, %v775_v12, %v4035_v42 }
 0x290   : > { %v769_v54 = vand.u32 2147483647, %v768_v41  ;;  %v1010_v55 = vsel %vm1009_vm9, %v1008_v40, 0  ;;  %v954_v56 = vsel %vm952_vm10, %v953_v49, %v4099_v32  ;;  %v878_v48 = vsub.s32 4, %v4077_v38 }
 0x291   : > { %vm3109_vm11 = vcmp.lt.s32.totalorder %v3108_v58, 0  ;;  %v1012_v61 = vand.u32 31, %v1010_v55  ;;  %v955_v51 = vadd.s32 %v954_v56, %v950_v44  ;;  %v4123_v10 = vshll.u32 %v1006_v50, 8 }
 0x292   : > { %v772_v13 = vmul.f32 %v771_v52, %v769_v54  ;;  %v863_v1 = vsel %vm3109_vm11, 0, %v3108_v58  ;;  %v1011_v17 = vshrl.u32 %v1010_v55, 5  ;;  %vm4137_vm12 = vcmp.le.f32.partialorder %v689_v28, 0.7853982 }
 0x293   : > { %v864_v47 = vsub.s32 32, %v863_v1  ;;  %v868_v53 = vsub.s32 4294967266, %v863_v1  ;;  %v1013_v19 = vsub.s32 32, %v1012_v61  ;;  %v865_v22 = vshll.u32 %v4083_v5, %v863_v1 }
 0x294   : > { %v773_v20 = vxor.u32 2147483648, %v772_v13  ;;  %v956_v42 = vadd.s32 536870912, %v955_v51  ;;  %v1015_v12 = vshll.u32 %v3630_v57, %v1012_v61  ;;  %v1018_v26 = vshll.u32 %v3631_v59, %v1012_v61 }
 0x295   : > { %v866_v23 = vshrl.u32 %v848_v9, %v864_v47  ;;  %v869_v24 = vadd.s32 127, %v868_v53  ;;  %v1016_v14 = vshrl.u32 %v3631_v59, %v1013_v19  ;;  %v1014_v30 = vshrl.u32 %v3630_v57, %v1013_v19 }
 0x296   : > { %v774_v27 = vsel %vm691_vm8, %v773_v20, %v772_v13  ;;  %v4131_v29 = vshrl.u32 %v956_v42, 30  ;;  %v1019_v63 = vshrl.u32 %v3632_v62, %v1013_v19  ;;  %v1021_v35 = vshll.u32 %v3632_v62, %v1012_v61 }
 0x297   : > { %v867_v32 = vor.u32 %v866_v23, %v865_v22  ;;  %v870_v34 = vshll.u32 %v869_v24, 23  ;;  %v1022_v15 = vshrl.u32 %v3633_v0, %v1013_v19  ;;  %vm794_vm13 = vcmp.lt.s32.totalorder %v3963_v33, 0 }
 0x298   : > { %v958_v21 = vshll.u32 %v4131_v29, 30  ;;  %v1017_v40 = vor.u32 %v1016_v14, %v1015_v12  ;;  %v1024_v41 = vshll.u32 %v3633_v0, %v1012_v61  ;;  %v1025_v9 = vshrl.u32 %v3634_v2, %v1013_v19 }
 0x299   : > { %v871_v44 = vor.u32 4788187, %v870_v34  ;;  %v874_v28 = vcvt.s32.f32 %v867_v32  ;;  %v1020_v50 = vor.u32 %v1019_v63, %v1018_v26  ;;  %v1023_v52 = vor.u32 %v1022_v15, %v1021_v35 }
 0x29a   : > { %v4147_v58 = vsub.s32 %v955_v51, %v958_v21  ;;  %v1026_v49 = vor.u32 %v1025_v9, %v1024_v41  ;;  %v1027_v54 = vshll.u32 %v3634_v2, %v1012_v61  ;;  %v1028_v55 = vshrl.u32 %v3635_v16, %v1013_v19 }
 0x29b   : > { %vm4153_vm14 = vcmp.le.f32.partialorder %v792_v37, 0.7853982  ;;  %v872_v13 = vand.u32 2147483647, %v871_v44  ;;  %vm1030_vm15 = vcmp.lt.s32.totalorder %v1011_v17, 1  ;;  %vm1031_vm2 = vcmp.lt.s32.totalorder %v1011_v17, 2 }
 0x29c   : > { %vm1033_vm3 = vcmp.lt.s32.totalorder %v1011_v17, 4  ;;  %v961_v1 = vsub.s32 0, %v4147_v58  ;;  %v1029_v47 = vor.u32 %v1028_v55, %v1027_v54  ;;  %vm1032_vm4 = vcmp.lt.s32.totalorder %v1011_v17, 3 }
 0x29d   : > { %v1035_v51 = vsel %vm1033_vm3, %v1023_v52, 2102212464  ;;  %v875_v53 = vmul.f32 %v874_v28, %v872_v13  ;;  %v1034_v20 = vsel %vm1030_vm15, %v1014_v30, %v1017_v40  ;;  %v1038_v61 = vsel %vm1030_vm15, %v1017_v40, %v1020_v50 }
 0x29e   : > { %v1039_v22 = vsel %vm1033_vm3, %v1026_v49, 920167782  ;;  %v3111_v19 = vmin.u32 %v961_v1, %v4147_v58  ;;  %v1036_v42 = vsel %vm1032_vm4, %v1020_v50, %v1035_v51  ;;  %v1042_v12 = vsel %vm1030_vm15, %v1020_v50, %v1023_v52 }
 0x29f   : > { %v1040_v37 = vsel %vm1032_vm4, %v1023_v52, %v1039_v22  ;;  %v876_v23 = vxor.u32 2147483648, %v875_v53  ;;  %v1043_v14 = vsel %vm1033_vm3, %v1029_v47, 1326507024  ;;  %v778_v26 = vsel %vm4137_vm12, 0, %v4119_v46 }
 0x2a0   : > { %v1041_v24 = vsel %vm1031_vm2, %v1038_v61, %v1040_v37  ;;  %v963_v63 = vclz %v3111_v19  ;;  %v1044_v32 = vsel %vm1032_vm4, %v1026_v49, %v1043_v14  ;;  %v1037_v15 = vsel %vm1031_vm2, %v1034_v20, %v1036_v42 }
 0x2a1   : > { %v4164_v34 = vmul.u32.u64.low %v4123_v10, %v1041_v24  ;;  %v4165_v30 = vmul.u32.u64.high %v4123_v10, %v1041_v24, %v4164_v34  ;;  %v877_v35 = vsel %vm794_vm13, %v876_v23, %v875_v53  ;;  %v1045_v21 = vsel %vm1031_vm2, %v1042_v12, %v1044_v32 }
 0x2a2   : > { %v777_v40 = vsel %vm4137_vm12, %v3956_v25, %v774_v27  ;;  %v3112_v41 = vadd.s32 4294967294, %v963_v63  ;;  %v4176_v46 = vmul.u32.u64.low %v4123_v10, %v1045_v21  ;;  %v4177_v9 = vmul.u32.u64.high %v4123_v10, %v1045_v21, %v4176_v46 }
 0x2a3   : > { %3451 = vcosq.f32 %v777_v40  ;;  %v1194_v44 = vadd.s32 3, %v778_v26  ;;  %v879_v17 = vsel %vm794_vm13, %v878_v48, %v4077_v38  ;;  %v880_v27 = vsel %vm4153_vm14, %v3963_v33, %v877_v35 }
 0x2a4   : > { %3453 = vsinq.f32 %v777_v40  ;;  %vm3113_vm5 = vcmp.lt.s32.totalorder %v3112_v41, 0  ;;  %v1056_v5 = vadd.s32 1, %v4165_v30  ;;  %v881_v28 = vsel %vm4153_vm14, 0, %v879_v17 }
 0x2a5   : > { %3455 = vcosq.f32 %v880_v27  ;;  %v966_v50 = vsel %vm3113_vm5, 0, %v3112_v41  ;;  %v951_v52 = vadd.s32 %v4098_v31, %v4104_v39  ;;  %v1053_v55 = vmul.u32 %v4123_v10, %v1037_v15 }
 0x2a6   : > { %v967_v49 = vsub.s32 32, %v966_v50  ;;  %v971_v54 = vsub.s32 4294967266, %v966_v50  ;;  %vm1055_vm6 = vc.u32 %v4177_v9, %v4164_v34  ;;  %v1195_v38 = vand.u32 3, %v1194_v44 }
 0x2a7   : > { %3457 = vsinq.f32 %v880_v27  ;;  %v1298_v48 = vadd.s32 3, %v881_v28  ;;  %v968_v13 = vshll.u32 %v4147_v58, %v966_v50  ;;  %v1057_v47 = vsel %vm1055_vm6, %v1056_v5, %v4165_v30 }
 0x2a8   : > { %v969_v1 = vshrl.u32 %v951_v52, %v967_v49  ;;  %v972_v56 = vadd.s32 127, %v971_v54  ;;  %v1058_v51 = vadd.s32 %v1057_v47, %v1053_v55  ;;  %v885_v53 = vand.u32 3, %v881_v28 }
 0x2a9   : > { %v4197_v39 = vstv %s3153_s20  ;;  %v4199_v61 = vstv %s3151_s22  ;;  %vm781_vm7 = vweird.f32 %v3956_v25  ;;  %vm1196_vm8 = vcmp.lt.s32.totalorder %v1195_v38, 2  ;;  %s3643_s20 = smov 24   ;;  %s4921_s22 = sld [smem:[#allocation17_spill]] }
 0x2aa   : > { %v970_v20 = vor.u32 %v969_v1, %v968_v13  ;;  %v973_v31 = vshll.u32 %v972_v56, 23  ;;  %v1059_v10 = vadd.s32 536870912, %v1058_v51  ;;  %v1299_v22 = vand.u32 3, %v1298_v48 }
 0x2ab   : > { %vm1197_vm9 = vcmp.eq.s32.totalorder %v1195_v38, 0  ;;  %vm1200_vm10 = vcmp.eq.s32.totalorder %v1195_v38, 2  ;;  %v782_v58 = vand.u32 3, %v778_v26  ;;  %vm884_vm11 = vweird.f32 %v3963_v33 }
 0x2ac   : > { %v974_v42 = vor.u32 4788187, %v973_v31  ;;  %v4202_v12 = vshrl.u32 %v1059_v10, 30  ;;  %vm886_vm12 = vcmp.lt.s32.totalorder %v885_v53, 2  ;;  %vm887_vm13 = vcmp.eq.s32.totalorder %v885_v53, 0 }
 0x2ad   : > { %v3452_v19 = vpop.eup %3451  ;;  %v977_v63 = vcvt.s32.f32 %v970_v20  ;;  %vm890_vm14 = vcmp.eq.s32.totalorder %v885_v53, 2  ;;  %vm1300_vm15 = vcmp.lt.s32.totalorder %v1299_v22, 2  ;;  %vm1301_vm2 = vcmp.eq.s32.totalorder %v1299_v22, 0 }
 0x2ae   : > { %v3454_v37 = vpop.eup %3453  ;;  %v788_v23 = vxor.u32 2147483648, %v3452_v19  ;;  %v975_v14 = vand.u32 2147483647, %v974_v42  ;;  %v1061_v30 = vshll.u32 %v4202_v12, 30  ;;  %vm1304_vm3 = vcmp.eq.s32.totalorder %v1299_v22, 2 }
 0x2af   : > { %v3456_v24 = vpop.eup %3455  ;;  %v785_v32 = vxor.u32 2147483648, %v3454_v37  ;;  %vm784_vm4 = vcmp.eq.s32.totalorder %v782_v58, 0  ;;  %vm787_vm5 = vcmp.eq.s32.totalorder %v782_v58, 2  ;;  %v981_v47 = vsub.s32 4, %v4131_v29 }
 0x2b0   : > { %v1202_v35 = vsel %vm1200_vm10, %v788_v23, %v3454_v37  ;;  %v891_v15 = vxor.u32 2147483648, %v3456_v24  ;;  %v978_v21 = vmul.f32 %v977_v63, %v975_v14  ;;  %v4209_v41 = vsub.s32 %v1058_v51, %v1061_v30 }
 0x2b1   : > { %v1199_v26 = vsel %vm1197_vm9, %v3452_v19, %v785_v32  ;;  %v3458_v40 = vpop.eup %3457  ;;  %v786_v38 = vsel %vm784_vm4, %v3452_v19, %v785_v32  ;;  %v789_v48 = vsel %vm787_vm5, %v788_v23, %v3454_v37  ;;  %vm897_vm6 = vcmp.lt.s32.totalorder %v3970_v43, 0 }
 0x2b2   : > { %v1203_v46 = vsel %vm1196_vm8, %v1199_v26, %v1202_v35  ;;  %v979_v44 = vxor.u32 2147483648, %v978_v21  ;;  %v888_v27 = vxor.u32 2147483648, %v3458_v40  ;;  %v1306_v5 = vsel %vm1304_vm3, %v891_v15, %v3458_v40 }
 0x2b3   : > { %v4214_v17 = vsel %vm781_vm7, nan, %v1203_v46  ;;  %v1064_v28 = vsub.s32 0, %v4209_v41  ;;  %v892_v49 = vsel %vm890_vm14, %v891_v15, %v3458_v40  ;;  %v686_v51 = vmul.f32 3.1415927, %v3946_v60 }
 0x2b4   : > { %v2157_v50 = vmul.f32 %v4197_v39, %v4214_v17  ;;  %v2081_v52 = vmul.f32 %v4199_v61, %v4214_v17  ;;  %v1303_v54 = vsel %vm1301_vm2, %v3456_v24, %v888_v27  ;;  %v889_v55 = vsel %vm887_vm13, %v3456_v24, %v888_v27 }
 0x2b5   : > { %v3115_v13 = vmin.u32 %v1064_v28, %v4209_v41  ;;  %v1307_v1 = vsel %vm1300_vm15, %v1303_v54, %v1306_v5  ;;  %v893_v56 = vsel %vm886_vm12, %v889_v55, %v892_v49  ;;  %v980_v10 = vsel %vm897_vm6, %v979_v44, %v978_v21 }
 0x2b6   : > { %2163 = vperm.xlu0 %3421, %v2157_v50   ;;  %2087 = vperm.xlu1 %3420, %v2081_v52   ;;  %v1308_v20 = vsel %vm884_vm11, nan, %v1307_v1  ;;  %v894_v31 = vsel %vm884_vm11, nan, %v893_v56  ;;  %vm783_vm8 = vcmp.lt.s32.totalorder %v782_v58, 2  ;;  %v4240_v42 = vstv %s4207_s19  ;;  %s2995_s19 = scalar_lea.sflag [#allocation4], %s3869_s0 }
 0x2b7   : > { %v1066_v19 = vclz %v3115_v13  ;;  %v2082_v22 = vmul.f32 %v4199_v61, %v1308_v20  ;;  %v790_v53 = vsel %vm783_vm8, %v786_v38, %v789_v48  ;;  %vm4244_vm9 = vcmp.le.f32.partialorder %v895_v18, 0.7853982 }
 0x2b8   : > { %v4251_v37 = vmul.f32 %v4197_v39, %v1308_v20  ;;  %v4254_v58 = vmul.f32 %v4240_v42, %v894_v31  ;;  %v982_v23 = vsel %vm897_vm6, %v981_v47, %v4131_v29  ;;  %v687_v18 = vmul.f32 3.1415927, %v3949_v4 }
 0x2b9   : > { %v3116_v33 = vadd.s32 4294967294, %v1066_v19  ;;  %v983_v24 = vsel %vm4244_vm9, %v3970_v43, %v980_v10  ;;  %v4264_v14 = vstv %s4222_s25  ;;  %v791_v63 = vsel %vm781_vm7, nan, %v790_v53 }
 0x2ba   : > { %3424 = vset.pattern.permute.xlu0 %v3629_v8  ;;  %1523 = vrot.lane.b32.xlu1 %v686_v51, %s3627_s14  ;;  %3459 = vcosq.f32 %v983_v24  ;;  %v2077_v30 = vmul.f32 %v4264_v14, %v894_v31  ;;  %v4271_v29 = vsel %vm4244_vm9, 0, %v982_v23  ;;  %v1054_v4 = vadd.s32 %v4164_v34, %v4177_v9 }
 0x2bb   : > { %2092 = vperm.xlu0 %3424, %v2082_v22   ;;  %vm3117_vm10 = vcmp.lt.s32.totalorder %v3116_v33, 0  ;;  %3461 = vsinq.f32 %v983_v24  ;;  %v2076_v25 = vmul.f32 %v4264_v14, %v791_v63  ;;  %v1402_v46 = vadd.s32 3, %v4271_v29 }
 0x2bc   : > { %v1069_v32 = vsel %vm3117_vm10, 0, %v3116_v33  ;;  %v4279_v44 = vstv %s3155_s18  ;;  %v4281_v27 = vstv %s3154_s28  ;;  %v2152_v52 = vmul.f32 %v4240_v42, %v791_v63  ;;  %s3641_s18 = smov 8  }
 0x2bd   : > { %v1070_v35 = vsub.s32 32, %v1069_v32  ;;  %v1074_v15 = vsub.s32 4294967266, %v1069_v32  ;;  %v1071_v21 = vshll.u32 %v4209_v41, %v1069_v32  ;;  %v4284_v9 = vmul.f32 %v4279_v44, %v1308_v20 }
 0x2be   : > { %1525 = vrot.lane.b32.xlu1 %v687_v18, %s3627_s14  ;;  %v4287_v28 = vmul.f32 %v4281_v27, %v894_v31  ;;  %v1403_v50 = vand.u32 3, %v1402_v46  ;;  %v1084_v1 = vsub.s32 4, %v4202_v12  ;;  %v2237_v20 = vmul.f32 %v4279_v44, %v4214_v17  ;;  %s3640_s14 = smov 48  }
 0x2bf   : > { %2132 = vperm.xlu0 %3424, %v2077_v30   ;;  %v1072_v26 = vshrl.u32 %v1054_v4, %v1070_v35  ;;  %v1075_v40 = vadd.s32 127, %v1074_v15  ;;  %vm1000_vm12 = vcmp.lt.s32.totalorder %v4003_v45, 0  ;;  %vm999_vm13 = vcmp.le.f32.partialorder %v998_v36, 0.7853982 }
 0x2c0   : > { %vm1408_vm7 = vcmp.eq.s32.totalorder %v1403_v50, 2  ;;  %vm1405_vm11 = vcmp.eq.s32.totalorder %v1403_v50, 0  ;;  %v3636_v31 = vmov 3   ;;  %vm1404_vm14 = vcmp.lt.s32.totalorder %v1403_v50, 2 }
 0x2c1   : > { %v1073_v5 = vor.u32 %v1072_v26, %v1071_v21  ;;  %v1076_v34 = vshll.u32 %v1075_v40, 23  ;;  %v1085_v22 = vsel %vm1000_vm12, %v1084_v1, %v4202_v12  ;;  %vm987_vm15 = vweird.f32 %v3970_v43 }
 0x2c2   : > { %2127 = vperm.xlu1 %3420, %v2076_v25   ;;  %v2232_v60 = vmul.f32 %v4281_v27, %v791_v63  ;;  %v1087_v33 = vsel %vm999_vm13, 0, %v1085_v22  ;;  %vm1090_vm9 = vweird.f32 %v4003_v45  ;;  %v988_v1 = vand.u32 3, %v4271_v29 }
 0x2c3   : > { %3429 = vset.pattern.permute.xlu0 %v3628_v7  ;;  %v1077_v41 = vor.u32 4788187, %v1076_v34  ;;  %v1080_v55 = vcvt.s32.f32 %v1073_v5  ;;  %v1506_v18 = vadd.s32 3, %v1087_v33  ;;  %v1091_v24 = vand.u32 3, %v1087_v33 }
 0x2c4   : > { %v4291_v49 = vpop.eup %3459  ;;  %vm990_vm10 = vcmp.eq.s32.totalorder %v988_v1, 0 }
 0x2c5   : > { %v1078_v54 = vand.u32 2147483647, %v1077_v41  ;;  %v994_v38 = vxor.u32 2147483648, %v4291_v49  ;;  %v4295_v48 = vpop.eup %3461  ;;  %v1507_v12 = vand.u32 3, %v1506_v18  ;;  %vm1096_vm3 = vcmp.eq.s32.totalorder %v1091_v24, 2 }
 0x2c6   : > { %3422 = vset.pattern.permute.xlu1 %v3628_v7  ;;  %v991_v56 = vxor.u32 2147483648, %v4295_v48  ;;  %vm1093_vm5 = vcmp.eq.s32.totalorder %v1091_v24, 0  ;;  %vm1092_vm8 = vcmp.lt.s32.totalorder %v1091_v24, 2 }
 0x2c7   : > { %2203 = vperm.xlu1 %3422, %v2152_v52   ;;  %v1081_v13 = vmul.f32 %v1080_v55, %v1078_v54  ;;  %v1410_v47 = vsel %vm1408_vm7, %v994_v38, %v4295_v48  ;;  %vm1512_vm2 = vcmp.eq.s32.totalorder %v1507_v12, 2  ;;  %vm1509_vm4 = vcmp.eq.s32.totalorder %v1507_v12, 0 }
 0x2c8   : > { %v1407_v10 = vsel %vm1405_vm11, %v4291_v49, %v991_v56  ;;  %vm1508_vm6 = vcmp.lt.s32.totalorder %v1507_v12, 2  ;;  %vm993_vm7 = vcmp.eq.s32.totalorder %v988_v1, 2  ;;  %vm989_vm11 = vcmp.lt.s32.totalorder %v988_v1, 2 }
 0x2c9   : > { %v1082_v51 = vxor.u32 2147483648, %v1081_v13  ;;  %v1411_v17 = vsel %vm1404_vm14, %v1407_v10, %v1410_v47  ;;  %v992_v47 = vsel %vm990_vm10, %v4291_v49, %v991_v56 }
 0x2ca   : > { %v1412_v36 = vsel %vm987_vm15, nan, %v1411_v17 }
 0x2cb   : > { %3423 = vset.pattern.permute.xlu1 %v3636_v31  ;;  %v1083_v19 = vsel %vm1000_vm12, %v1082_v51, %v1081_v13  ;;  %v4318_v23 = vmul.f32 %v4279_v44, %v1412_v36  ;;  %v1522_v13 = vpop.permute.xlu0 %1521 }
 0x2cc   : > { %2243 = vperm.xlu1 %3423, %v2237_v20   ;;  %v1086_v53 = vsel %vm999_vm13, %v4003_v45, %v1083_v19  ;;  %v2083_v45 = vmul.f32 %v4199_v61, %v1412_v36 }
 0x2cd   : > { %3463 = vcosq.f32 %v1086_v53 }
 0x2ce   : > { %3465 = vsinq.f32 %v1086_v53 }
 0x2cf   : > { %v1528_v43 = vpop.permute.xlu0 %1527 }
 0x2d0   : > { %2283 = vperm.xlu1 %3423, %v2232_v60  }
 0x2d7   : > { %v3464_v32 = vpop.eup %3463 }
 0x2d8   : > { %v3466_v30 = vpop.eup %3465  ;;  %v1097_v4 = vxor.u32 2147483648, %v3464_v32 }
 0x2d9   : > { %v1094_v35 = vxor.u32 2147483648, %v3466_v30 }
 0x2da   : > { %v1514_v15 = vsel %vm1512_vm2, %v1097_v4, %v3466_v30  ;;  %v1098_v25 = vsel %vm1096_vm3, %v1097_v4, %v3466_v30 }
 0x2db   : > { %v1511_v63 = vsel %vm1509_vm4, %v3464_v32, %v1094_v35  ;;  %v1095_v21 = vsel %vm1093_vm5, %v3464_v32, %v1094_v35 }
 0x2dc   : > { %v1515_v26 = vsel %vm1508_vm6, %v1511_v63, %v1514_v15  ;;  %v1099_v40 = vsel %vm1092_vm8, %v1095_v21, %v1098_v25 }
 0x2dd   : > { %v1516_v46 = vsel %vm1090_vm9, nan, %v1515_v26  ;;  %v1100_v5 = vsel %vm1090_vm9, nan, %v1099_v40 }
 0x2de   : > { %v2160_v34 = vmul.f32 %v4197_v39, %v1516_v46  ;;  %v2084_v41 = vmul.f32 %v4199_v61, %v1516_v46  ;;  %v2079_v50 = vmul.f32 %v4264_v14, %v1100_v5  ;;  %v2155_v52 = vmul.f32 %v4240_v42, %v1100_v5 }
 0x2df   : > { %v2240_v54 = vmul.f32 %v4279_v44, %v1516_v46  ;;  %v2235_v55 = vmul.f32 %v4281_v27, %v1100_v5  ;;  %v2159_v44 = vmul.f32 %v4197_v39, %v1412_v36 }
 0x2e0   : > { %2178 = vperm.xlu0 %3429, %v2160_v34  }
 0x2f9   : > { %1533 = vxpose.xlu1.b32.start.end [1/1] (short) (narrow) %v1522_v13, 8 }
 0x317   : > { %3425 = vset.pattern.permute.xlu1 %v3628_v7 }
 0x318   : > { %2168 = vperm.xlu1 %3425, %v4251_v37   ;;  %v995_v37 = vsel %vm993_vm7, %v994_v38, %v4295_v48 }
 0x319   : > { %v996_v61 = vsel %vm989_vm11, %v992_v47, %v995_v37 }
 0x31c   : > { %2208 = vperm.xlu1 %3425, %v4254_v58   ;;  %v997_v58 = vsel %vm987_vm15, nan, %v996_v61 }
 0x31d   : > { %v2078_v39 = vmul.f32 %v4264_v14, %v997_v58  ;;  %v2154_v29 = vmul.f32 %v4240_v42, %v997_v58  ;;  %v2234_v14 = vmul.f32 %v4281_v27, %v997_v58 }
 0x320   : > { %3426 = vset.pattern.permute.xlu1 %v3629_v8 }
 0x321   : > { %2097 = vperm.xlu1 %3426, %v2083_v45  }
 0x325   : > { %3427 = vset.pattern.permute.xlu1 %v3628_v7 }
 0x326   : > { %2173 = vperm.xlu1 %3427, %v2159_v44  }
 0x32a   : > { %3428 = vset.pattern.permute.xlu1 %v3629_v8 }
 0x32b   : > { %2102 = vperm.xlu1 %3428, %v2084_v41  }
 0x32f   : > { %2137 = vperm.xlu1 %3428, %v2078_v39  }
 0x333   : > { %3431 = vset.pattern.permute.xlu1 %v3628_v7 }
 0x334   : > { %2213 = vperm.xlu1 %3431, %v2154_v29  }
 0x335   : > { %v4347_v49 = vpop.permute.xlu1 %2087 }
 0x338   : > { %3432 = vset.pattern.permute.xlu1 %v3629_v8 }
 0x339   : > { %v1524_v38 = vpop.permute.xlu1 %1523  ;;  %2142 = vperm.xlu1 %3432, %v2079_v50  }
 0x33a   : > { %1565 = vxpose.xlu0.b32.start.end [1/1] (short) (narrow) %v1524_v38, 8 }
 0x33d   : > { %v1526_v48 = vpop.permute.xlu1 %1525  ;;  %3433 = vset.pattern.permute.xlu1 %v3628_v7 }
 0x33e   : > { %1597 = vxpose.xlu0.b32.start.end [1/1] (short) (narrow) %v1526_v48, 8  ;;  %2218 = vperm.xlu1 %3433, %v2155_v52  }
 0x341   : > { %v4353_v42 = vpop.permute.xlu1 %2127 }
 0x342   : > { %3434 = vset.pattern.permute.xlu1 %v3636_v31  ;;  %1629 = vxpose.xlu0.b32.start.end [1/1] (short) (narrow) %v1528_v43, 8 }
 0x343   : > { %2293 = vperm.xlu1 %3434, %v2234_v14  }
 0x346   : > { %v4355_v56 = vpop.permute.xlu1 %2203 }
 0x34b   : > { %v4359_v8 = vpop.permute.xlu1 %2243 }
 0x34f   : > { %v4363_v7 = vpop.permute.xlu1 %2283 }
 0x36b   : > { %3430 = vset.pattern.permute.xlu0 %v3636_v31 }
 0x36c   : > { %2248 = vperm.xlu0 %3430, %v4284_v9  }
 0x370   : > { %2288 = vperm.xlu0 %3430, %v4287_v28  }
 0x374   : > { %2253 = vperm.xlu0 %3430, %v4318_v23  }
 0x378   : > { %2258 = vperm.xlu0 %3430, %v2240_v54  }
 0x379   : > { %v4365_v27 = vpop.trf.xlu1 }
 0x37a   : > { %v1664_v51 = vand.u32 2139095040, %v4365_v27  ;;  %v1661_v10 = vand.u32 2147483647, %v4365_v27  ;;  %vm1663_vm5 = vcmp.lt.s32.totalorder %v4365_v27, 0 }
 0x37c   : > { %v1665_v20 = vshrl.u32 %v1664_v51, 23  ;;  %2298 = vperm.xlu0 %3430, %v2235_v55   ;;  %v1668_v9 = vand.u32 8388607, %v1661_v10  ;;  %vm4403_vm6 = vcmp.le.f32.partialorder %v1661_v10, 0.7853982  ;;  %v2105_v10 = vlaneseq }
 0x37e   : > { %v3134_v31 = vadd.s32 4294967169, %v1665_v20  ;;  %v1669_v17 = vor.u32 8388608, %v1668_v9 }
 0x380   : > { %v1671_v19 = vadd.s32 1, %v3134_v31  ;;  %v1709_v25 = vshll.u32 %v1669_v17, 8 }
 0x382   : > { %vm1672_vm12 = vcmp.gt.s32.totalorder %v1671_v19, 0 }
 0x383   : > { %v1673_v28 = vsel %vm1672_vm12, %v1671_v19, 0 }
 0x384   : > { %v1675_v22 = vand.u32 31, %v1673_v28  ;;  %v1674_v53 = vshrl.u32 %v1673_v28, 5  ;;  %v4391_v28 = vpop.permute.xlu0 %2163 }
 0x386   : > { %v1676_v36 = vsub.s32 32, %v1675_v22  ;;  %v1678_v60 = vshll.u32 %v3630_v57, %v1675_v22  ;;  %v1681_v33 = vshll.u32 %v3631_v59, %v1675_v22  ;;  %v1684_v23 = vshll.u32 %v3632_v62, %v1675_v22 }
 0x387   : > { %v1687_v18 = vshll.u32 %v3633_v0, %v1675_v22  ;;  %v1690_v12 = vshll.u32 %v3634_v2, %v1675_v22  ;;  %vm1693_vm13 = vcmp.lt.s32.totalorder %v1674_v53, 1  ;;  %vm1696_vm14 = vcmp.lt.s32.totalorder %v1674_v53, 4 }
 0x388   : > { %v1677_v24 = vshrl.u32 %v3630_v57, %v1676_v36  ;;  %v1679_v32 = vshrl.u32 %v3631_v59, %v1676_v36  ;;  %v1682_v30 = vshrl.u32 %v3632_v62, %v1676_v36  ;;  %v1685_v4 = vshrl.u32 %v3633_v0, %v1676_v36 }
 0x389   : > { %v1688_v35 = vshrl.u32 %v3634_v2, %v1676_v36  ;;  %v1691_v15 = vshrl.u32 %v3635_v16, %v1676_v36  ;;  %vm1694_vm15 = vcmp.lt.s32.totalorder %v1674_v53, 2  ;;  %vm1695_vm2 = vcmp.lt.s32.totalorder %v1674_v53, 3  ;;  %v4394_v36 = vpop.permute.xlu0 %2092 }
 0x38a   : > { %v1680_v63 = vor.u32 %v1679_v32, %v1678_v60  ;;  %v1683_v21 = vor.u32 %v1682_v30, %v1681_v33  ;;  %v1686_v26 = vor.u32 %v1685_v4, %v1684_v23 }
 0x38b   : > { %v1689_v40 = vor.u32 %v1688_v35, %v1687_v18  ;;  %v1692_v46 = vor.u32 %v1691_v15, %v1690_v12 }
 0x38c   : > { %v1697_v5 = vsel %vm1693_vm13, %v1677_v24, %v1680_v63  ;;  %v1698_v34 = vsel %vm1696_vm14, %v1686_v26, 2102212464  ;;  %v1701_v41 = vsel %vm1693_vm13, %v1680_v63, %v1683_v21  ;;  %v1705_v50 = vsel %vm1693_vm13, %v1683_v21, %v1686_v26 }
 0x38d   : > { %v1699_v52 = vsel %vm1695_vm2, %v1683_v21, %v1698_v34  ;;  %v1702_v54 = vsel %vm1696_vm14, %v1689_v40, 920167782  ;;  %v1706_v55 = vsel %vm1696_vm14, %v1692_v46, 1326507024  ;;  %v4396_v4 = vpop.permute.xlu0 %2132 }
 0x38e   : > { %v1703_v13 = vsel %vm1695_vm2, %v1686_v26, %v1702_v54  ;;  %v1707_v45 = vsel %vm1695_vm2, %v1689_v40, %v1706_v55  ;;  %v1700_v1 = vsel %vm1694_vm15, %v1697_v5, %v1699_v52  ;;  %vm1753_vm2 = vweird.f32 %v4365_v27 }
 0x38f   : > { %v1704_v44 = vsel %vm1694_vm15, %v1701_v41, %v1703_v13  ;;  %v1708_v47 = vsel %vm1694_vm15, %v1705_v50, %v1707_v45  ;;  %v1716_v29 = vmul.u32 %v1709_v25, %v1700_v1 }
 0x390   : > { %v4382_v37 = vmul.u32.u64.low %v1709_v25, %v1708_v47  ;;  %v4383_v61 = vmul.u32.u64.high %v1709_v25, %v1708_v47, %v4382_v37  ;;  %v4385_v58 = vmul.u32.u64.low %v1709_v25, %v1704_v44  ;;  %v4386_v39 = vmul.u32.u64.high %v1709_v25, %v1704_v44, %v4385_v58 }
 0x391   : > { %v4398_v21 = vpop.permute.xlu0 %2178 }
 0x392   : > { %vm1718_vm3 = vc.u32 %v4383_v61, %v4385_v58  ;;  %v1719_v38 = vadd.s32 1, %v4386_v39  ;;  %v1717_v53 = vadd.s32 %v4385_v58, %v4383_v61  ;;  %v4422_v61 = vshrl.u32 %v2105_v10, 7 }
 0x394   : > { %v1720_v48 = vsel %vm1718_vm3, %v1719_v38, %v4386_v39 }
 0x395   : > { %v1721_v43 = vadd.s32 %v1720_v48, %v1716_v29 }
 0x397   : > { %v1722_v14 = vadd.s32 536870912, %v1721_v43 }
 0x399   : > { %v1723_v51 = vshrl.u32 %v1722_v14, 30 }
 0x39b   : > { %v1724_v20 = vshll.u32 %v1723_v51, 30  ;;  %v1747_v46 = vsub.s32 4, %v1723_v51 }
 0x39d   : > { %v1725_v31 = vsub.s32 %v1721_v43, %v1724_v20  ;;  %v1748_v50 = vsel %vm1663_vm5, %v1747_v46, %v1723_v51  ;;  %v4433_v20 = vsub.s32 1, %v4422_v61 }
 0x39e   : > { %v1750_v45 = vsel %vm4403_vm6, 0, %v1748_v50 }
 0x39f   : > { %v1727_v19 = vsub.s32 0, %v1725_v31  ;;  %v4424_v58 = vand.u32 3, %v1750_v45 }
 0x3a1   : > { %v3135_v9 = vmin.u32 %v1727_v19, %v1725_v31  ;;  %vm1756_vm9 = vcmp.eq.s32.totalorder %v4424_v58, 0  ;;  %vm1759_vm10 = vcmp.eq.s32.totalorder %v4424_v58, 2  ;;  %vm1755_vm15 = vcmp.lt.s32.totalorder %v4424_v58, 2 }
 0x3a3   : > { %v1729_v22 = vclz %v3135_v9 }
 0x3a5   : > { %v3136_v17 = vadd.s32 4294967294, %v1729_v22 }
 0x3a7   : > { %vm3137_vm4 = vcmp.lt.s32.totalorder %v3136_v17, 0 }
 0x3a8   : > { %v1732_v60 = vsel %vm3137_vm4, 0, %v3136_v17 }
 0x3a9   : > { %v1733_v33 = vsub.s32 32, %v1732_v60  ;;  %v1734_v23 = vshll.u32 %v1725_v31, %v1732_v60  ;;  %v1737_v18 = vsub.s32 4294967266, %v1732_v60 }
 0x3ab   : > { %v1735_v12 = vshrl.u32 %v1717_v53, %v1733_v33  ;;  %v1738_v24 = vadd.s32 127, %v1737_v18 }
 0x3ad   : > { %v1736_v32 = vor.u32 %v1735_v12, %v1734_v23  ;;  %v1739_v30 = vshll.u32 %v1738_v24, 23 }
 0x3af   : > { %v1740_v35 = vor.u32 4788187, %v1739_v30  ;;  %v1743_v15 = vcvt.s32.f32 %v1736_v32 }
 0x3b1   : > { %v1741_v25 = vand.u32 2147483647, %v1740_v35 }
 0x3b3   : > { %v1744_v63 = vmul.f32 %v1743_v15, %v1741_v25 }
 0x3b5   : > { %v1745_v40 = vxor.u32 2147483648, %v1744_v63 }
 0x3b7   : > { %v1746_v5 = vsel %vm1663_vm5, %v1745_v40, %v1744_v63 }
 0x3b8   : > { %v1749_v34 = vsel %vm4403_vm6, %v4365_v27, %v1746_v5 }
 0x3b9   : > { %3467 = vcosq.f32 %v1749_v34 }
 0x3ba   : > { %v4410_v41 = vpop.trf.xlu0  ;;  %3469 = vsinq.f32 %v1749_v34 }
 0x3bb   : > { %v1764_v52 = vand.u32 2147483647, %v4410_v41  ;;  %v1767_v54 = vand.u32 2139095040, %v4410_v41 }
 0x3bd   : > { %v1768_v55 = vshrl.u32 %v1767_v54, 23  ;;  %v1771_v13 = vand.u32 8388607, %v1764_v52 }
 0x3be   : > { %v4418_v1 = vpop.trf.xlu0 }
 0x3bf   : > { %v3138_v44 = vadd.s32 4294967169, %v1768_v55  ;;  %v1867_v47 = vand.u32 2147483647, %v4418_v1  ;;  %v1870_v37 = vand.u32 2139095040, %v4418_v1  ;;  %v1772_v39 = vor.u32 8388608, %v1771_v13 }
 0x3c1   : > { %v1774_v29 = vadd.s32 1, %v3138_v44  ;;  %v1871_v38 = vshrl.u32 %v1870_v37, 23  ;;  %v4428_v48 = vand.u32 8388607, %v1867_v47  ;;  %v4437_v9 = vshll.u32 %v1772_v39, 8 }
 0x3c2   : > { %v4430_v43 = vpop.trf.xlu0 }
 0x3c3   : > { %vm1775_vm8 = vcmp.gt.s32.totalorder %v1774_v29, 0  ;;  %v3142_v51 = vadd.s32 4294967169, %v1871_v38  ;;  %v3468_v31 = vpop.eup %3467  ;;  %v1875_v53 = vor.u32 8388608, %v4428_v48  ;;  %v1970_v60 = vand.u32 2147483647, %v4430_v43 }
 0x3c4   : > { %v1776_v14 = vsel %vm1775_vm8, %v1774_v29, 0  ;;  %v3470_v22 = vpop.eup %3469  ;;  %v1760_v17 = vxor.u32 2147483648, %v3468_v31  ;;  %v1973_v33 = vand.u32 2139095040, %v4430_v43 }
 0x3c5   : > { %v1778_v19 = vand.u32 31, %v1776_v14  ;;  %v1757_v23 = vxor.u32 2147483648, %v3470_v22  ;;  %v1777_v18 = vshrl.u32 %v1776_v14, 5  ;;  %v1877_v24 = vadd.s32 1, %v3142_v51 }
 0x3c6   : > { %v1761_v32 = vsel %vm1759_vm10, %v1760_v17, %v3470_v22 }
 0x3c7   : > { %v1779_v12 = vsub.s32 32, %v1778_v19  ;;  %v1781_v30 = vshll.u32 %v3630_v57, %v1778_v19  ;;  %v1784_v35 = vshll.u32 %v3631_v59, %v1778_v19  ;;  %v1787_v15 = vshll.u32 %v3632_v62, %v1778_v19 }
 0x3c8   : > { %v1790_v26 = vshll.u32 %v3633_v0, %v1778_v19  ;;  %v1793_v40 = vshll.u32 %v3634_v2, %v1778_v19  ;;  %v1758_v46 = vsel %vm1756_vm9, %v3468_v31, %v1757_v23  ;;  %vm1796_vm7 = vcmp.lt.s32.totalorder %v1777_v18, 1 }
 0x3c9   : > { %v1782_v25 = vshrl.u32 %v3631_v59, %v1779_v12  ;;  %v1785_v63 = vshrl.u32 %v3632_v62, %v1779_v12  ;;  %v1788_v5 = vshrl.u32 %v3633_v0, %v1779_v12  ;;  %v1791_v34 = vshrl.u32 %v3634_v2, %v1779_v12 }
 0x3ca   : > { %v1794_v50 = vshrl.u32 %v3635_v16, %v1779_v12  ;;  %v1780_v54 = vshrl.u32 %v3630_v57, %v1779_v12  ;;  %vm1797_vm11 = vcmp.lt.s32.totalorder %v1777_v18, 2  ;;  %vm1798_vm12 = vcmp.lt.s32.totalorder %v1777_v18, 3 }
 0x3cb   : > { %v1783_v10 = vor.u32 %v1782_v25, %v1781_v30  ;;  %v1786_v55 = vor.u32 %v1785_v63, %v1784_v35  ;;  %v1789_v13 = vor.u32 %v1788_v5, %v1787_v15  ;;  %v1792_v45 = vor.u32 %v1791_v34, %v1790_v26 }
 0x3cc   : > { %v1795_v44 = vor.u32 %v1794_v50, %v1793_v40  ;;  %vm1799_vm13 = vcmp.lt.s32.totalorder %v1777_v18, 4  ;;  %vm1878_vm14 = vcmp.gt.s32.totalorder %v1877_v24, 0  ;;  %v4466_v63 = vsub.s32 2, %v4422_v61 }
 0x3cd   : > { %v1800_v37 = vsel %vm1796_vm7, %v1780_v54, %v1783_v10  ;;  %v1804_v39 = vsel %vm1796_vm7, %v1783_v10, %v1786_v55  ;;  %v1801_v29 = vsel %vm1799_vm13, %v1789_v13, 2102212464  ;;  %v1805_v38 = vsel %vm1799_vm13, %v1792_v45, 920167782 }
 0x3ce   : > { %v1808_v48 = vsel %vm1796_vm7, %v1786_v55, %v1789_v13  ;;  %v1809_v14 = vsel %vm1799_vm13, %v1795_v44, 1326507024  ;;  %v1802_v51 = vsel %vm1798_vm12, %v1786_v55, %v1801_v29  ;;  %v1806_v31 = vsel %vm1798_vm12, %v1789_v13, %v1805_v38 }
 0x3cf   : > { %v1810_v19 = vsel %vm1798_vm12, %v1792_v45, %v1809_v14  ;;  %v1803_v22 = vsel %vm1797_vm11, %v1800_v37, %v1802_v51  ;;  %v1807_v17 = vsel %vm1797_vm11, %v1804_v39, %v1806_v31  ;;  %v1879_v12 = vsel %vm1878_vm14, %v1877_v24, 0 }
 0x3d0   : > { %v1811_v23 = vsel %vm1797_vm11, %v1808_v48, %v1810_v19  ;;  %v4460_v18 = vmul.u32.u64.low %v4437_v9, %v1807_v17  ;;  %v4461_v15 = vmul.u32.u64.high %v4437_v9, %v1807_v17, %v4460_v18  ;;  %v1881_v25 = vand.u32 31, %v1879_v12 }
 0x3d1   : > { %v4456_v30 = vmul.u32.u64.low %v4437_v9, %v1811_v23  ;;  %v4457_v35 = vmul.u32.u64.high %v4437_v9, %v1811_v23, %v4456_v30  ;;  %v4469_v26 = vsub.s32 3, %v4422_v61  ;;  %v1762_v40 = vsel %vm1755_vm15, %v1758_v46, %v1761_v32 }
 0x3d2   : > { %v4471_v24 = vshll.u32 %v1875_v53, 8  ;;  %v1974_v5 = vshrl.u32 %v1973_v33, 23  ;;  %v4475_v34 = vand.u32 8388607, %v1970_v60  ;;  %v1819_v50 = vmul.u32 %v4437_v9, %v1803_v22 }
 0x3d3   : > { %v1880_v58 = vshrl.u32 %v1879_v12, 5  ;;  %v1882_v54 = vsub.s32 32, %v1881_v25  ;;  %v1884_v10 = vshll.u32 %v3630_v57, %v1881_v25  ;;  %vm1821_vm3 = vc.u32 %v4457_v35, %v4460_v18 }
 0x3d4   : > { %v1822_v61 = vadd.s32 1, %v4461_v15  ;;  %v1887_v53 = vshll.u32 %v3631_v59, %v1881_v25  ;;  %v1890_v33 = vshll.u32 %v3632_v62, %v1881_v25  ;;  %v1893_v9 = vshll.u32 %v3633_v0, %v1881_v25 }
 0x3d5   : > { %v1885_v32 = vshrl.u32 %v3631_v59, %v1882_v54  ;;  %v1888_v46 = vshrl.u32 %v3632_v62, %v1882_v54  ;;  %v1891_v55 = vshrl.u32 %v3633_v0, %v1882_v54  ;;  %v1894_v45 = vshrl.u32 %v3634_v2, %v1882_v54 }
 0x3d6   : > { %v1823_v13 = vsel %vm1821_vm3, %v1822_v61, %v4461_v15  ;;  %v1896_v44 = vshll.u32 %v3634_v2, %v1881_v25  ;;  %v1897_v37 = vshrl.u32 %v3635_v16, %v1882_v54  ;;  %v1883_v14 = vshrl.u32 %v3630_v57, %v1882_v54 }
 0x3d7   : > { %v1824_v39 = vadd.s32 %v1823_v13, %v1819_v50  ;;  %v1886_v29 = vor.u32 %v1885_v32, %v1884_v10  ;;  %v1889_v38 = vor.u32 %v1888_v46, %v1887_v53  ;;  %v1892_v48 = vor.u32 %v1891_v55, %v1890_v33 }
 0x3d8   : > { %v1895_v51 = vor.u32 %v1894_v45, %v1893_v9  ;;  %v1898_v31 = vor.u32 %v1897_v37, %v1896_v44  ;;  %v3146_v19 = vadd.s32 4294967169, %v1974_v5  ;;  %vm1899_vm4 = vcmp.lt.s32.totalorder %v1880_v58, 1 }
 0x3d9   : > { %v1825_v22 = vadd.s32 536870912, %v1824_v39  ;;  %vm1901_vm5 = vcmp.lt.s32.totalorder %v1880_v58, 3  ;;  %vm1902_vm6 = vcmp.lt.s32.totalorder %v1880_v58, 4  ;;  %v1907_v23 = vsel %vm1899_vm4, %v1886_v29, %v1889_v38 }
 0x3da   : > { %v1904_v17 = vsel %vm1902_vm6, %v1892_v48, 2102212464  ;;  %v1908_v12 = vsel %vm1902_vm6, %v1895_v51, 920167782  ;;  %v1911_v30 = vsel %vm1899_vm4, %v1889_v38, %v1892_v48  ;;  %vm1900_vm8 = vcmp.lt.s32.totalorder %v1880_v58, 2 }
 0x3db   : > { %v4496_v15 = vshrl.u32 %v1825_v22, 30  ;;  %v1909_v25 = vsel %vm1901_vm5, %v1892_v48, %v1908_v12  ;;  %v1912_v50 = vsel %vm1902_vm6, %v1898_v31, 1326507024  ;;  %v4501_v54 = vsel %vm1753_vm2, nan, %v1762_v40 }
 0x3dc   : > { %v1910_v5 = vsel %vm1900_vm8, %v1907_v23, %v1909_v25  ;;  %v1913_v10 = vsel %vm1901_vm5, %v1895_v51, %v1912_v50  ;;  %v1980_v61 = vadd.s32 1, %v3146_v19  ;;  %v1903_v33 = vsel %vm1899_vm4, %v1883_v14, %v1886_v29 }
 0x3dd   : > { %v1827_v53 = vshll.u32 %v4496_v15, 30  ;;  %v1905_v32 = vsel %vm1901_vm5, %v1889_v38, %v1904_v17  ;;  %v1914_v46 = vsel %vm1900_vm8, %v1911_v30, %v1913_v10  ;;  %v2108_v45 = vrot.slane %v4501_v54, %v4433_v20 }
 0x3de   : > { %v4510_v55 = vmul.u32.u64.low %v4471_v24, %v1914_v46  ;;  %v4511_v9 = vmul.u32.u64.high %v4471_v24, %v1914_v46, %v4510_v55  ;;  %v4514_v27 = vmul.u32.u64.low %v4471_v24, %v1910_v5  ;;  %v4515_v40 = vmul.u32.u64.high %v4471_v24, %v1910_v5, %v4514_v27 }
 0x3df   : > { %v4518_v13 = vsub.s32 %v1824_v39, %v1827_v53  ;;  %vm1981_vm9 = vcmp.gt.s32.totalorder %v1980_v61, 0  ;;  %v1906_v44 = vsel %vm1900_vm8, %v1903_v33, %v1905_v32  ;;  %v1978_v38 = vor.u32 8388608, %v4475_v34 }
 0x3e0   : > { %v1982_v37 = vsel %vm1981_vm9, %v1980_v61, 0  ;;  %v2184_v14 = vrot.slane %v4501_v54, %v4466_v63  ;;  %v1820_v51 = vadd.s32 %v4460_v18, %v4457_v35  ;;  %vm1924_vm10 = vc.u32 %v4511_v9, %v4514_v27 }
 0x3e1   : > { %v1830_v29 = vsub.s32 0, %v4518_v13  ;;  %v1984_v48 = vand.u32 31, %v1982_v37  ;;  %v1925_v39 = vadd.s32 1, %v4515_v40  ;;  %v2264_v58 = vrot.slane %v4501_v54, %v4469_v26 }
 0x3e2   : > { %v1922_v19 = vmul.u32 %v4471_v24, %v1906_v44  ;;  %v4537_v22 = vmul.f32 %v2108_v45, %v4347_v49  ;;  %v4540_v23 = vshrl.u32 %v1982_v37, 5  ;;  %v4551_v32 = vshll.u32 %v1978_v38, 8  ;;  %v4554_v45 = vpop.permute.xlu1 %2168 }
 0x3e3   : > { %v3139_v31 = vmin.u32 %v1830_v29, %v4518_v13  ;;  %v1985_v34 = vsub.s32 32, %v1984_v48  ;;  %v1926_v17 = vsel %vm1924_vm10, %v1925_v39, %v4515_v40  ;;  %v1987_v35 = vshll.u32 %v3630_v57, %v1984_v48 }
 0x3e4   : > { %v1990_v18 = vshll.u32 %v3631_v59, %v1984_v48  ;;  %v1927_v30 = vadd.s32 %v1926_v17, %v1922_v19  ;;  %v1996_v50 = vshll.u32 %v3633_v0, %v1984_v48  ;;  %v1993_v33 = vshll.u32 %v3632_v62, %v1984_v48 }
 0x3e5   : > { %v1832_v12 = vclz %v3139_v31  ;;  %v1988_v25 = vshrl.u32 %v3631_v59, %v1985_v34  ;;  %v1991_v24 = vshrl.u32 %v3632_v62, %v1985_v34  ;;  %v1994_v5 = vshrl.u32 %v3633_v0, %v1985_v34 }
 0x3e6   : > { %v1997_v49 = vshrl.u32 %v3634_v2, %v1985_v34  ;;  %v2000_v10 = vshrl.u32 %v3635_v16, %v1985_v34  ;;  %v1928_v53 = vadd.s32 536870912, %v1927_v30  ;;  %v1999_v59 = vshll.u32 %v3634_v2, %v1984_v48 }
 0x3e7   : > { %v3140_v61 = vadd.s32 4294967294, %v1832_v12  ;;  %v1989_v46 = vor.u32 %v1988_v25, %v1987_v35  ;;  %v1992_v55 = vor.u32 %v1991_v24, %v1990_v18  ;;  %v1995_v0 = vor.u32 %v1994_v5, %v1993_v33 }
 0x3e8   : > { %v1998_v40 = vor.u32 %v1997_v49, %v1996_v50  ;;  %v4556_v44 = vshrl.u32 %v1928_v53, 30  ;;  %v2197_v37 = vmul.f32 %v2184_v14, %v4391_v28  ;;  %v2001_v29 = vor.u32 %v2000_v10, %v1999_v59 }
 0x3e9   : > { %vm3141_vm7 = vcmp.lt.s32.totalorder %v3140_v61, 0  ;;  %vm2002_vm11 = vcmp.lt.s32.totalorder %v4540_v23, 1  ;;  %v2145_v62 = vsub.f32 %v4353_v42, %v4537_v22  ;;  %vm2005_vm12 = vcmp.lt.s32.totalorder %v4540_v23, 4 }
 0x3ea   : > { %v1835_v16 = vsel %vm3141_vm7, 0, %v3140_v61  ;;  %v1930_v31 = vshll.u32 %v4556_v44, 30  ;;  %vm2004_vm13 = vcmp.lt.s32.totalorder %v4540_v23, 3  ;;  %v2010_v28 = vsel %vm2002_vm11, %v1989_v46, %v1992_v55 }
 0x3eb   : > { %v1836_v38 = vsub.s32 32, %v1835_v16  ;;  %v1840_v39 = vsub.s32 4294967266, %v1835_v16  ;;  %v1837_v2 = vshll.u32 %v4518_v13, %v1835_v16  ;;  %v2011_v48 = vsel %vm2005_vm12, %v1998_v40, 920167782  ;;  %v4573_v13 = vpop.permute.xlu1 %2208 }
 0x3ec   : > { %v1931_v17 = vsub.s32 %v1927_v30, %v1930_v31  ;;  %v2007_v35 = vsel %vm2005_vm12, %v1995_v0, 2102212464  ;;  %v1986_v42 = vshrl.u32 %v3630_v57, %v1985_v34  ;;  %v2012_v22 = vsel %vm2004_vm13, %v1995_v0, %v2011_v48 }
 0x3ed   : > { %v1838_v14 = vshrl.u32 %v1820_v51, %v1836_v38  ;;  %v1841_v19 = vadd.s32 127, %v1840_v39  ;;  %v2014_v18 = vsel %vm2002_vm11, %v1992_v55, %v1995_v0  ;;  %v2015_v12 = vsel %vm2005_vm12, %v2001_v29, 1326507024 }
 0x3ee   : > { %v1933_v24 = vsub.s32 0, %v1931_v17  ;;  %vm2003_vm14 = vcmp.lt.s32.totalorder %v4540_v23, 2  ;;  %v2006_v51 = vsel %vm2002_vm11, %v1986_v42, %v1989_v46  ;;  %v2008_v57 = vsel %vm2004_vm13, %v1992_v55, %v2007_v35 }
 0x3ef   : > { %v1839_v25 = vor.u32 %v1838_v14, %v1837_v2  ;;  %v1842_v50 = vshll.u32 %v1841_v19, 23  ;;  %v2013_v34 = vsel %vm2003_vm14, %v2010_v28, %v2012_v22  ;;  %v2016_v30 = vsel %vm2004_vm13, %v1998_v40, %v2015_v12  ;;  %v4596_v29 = vpop.permute.xlu1 %2097 }
 0x3f0   : > { %v3143_v10 = vmin.u32 %v1933_v24, %v1931_v17  ;;  %v2017_v61 = vsel %vm2003_vm14, %v2014_v18, %v2016_v30  ;;  %v4587_v59 = vmul.u32.u64.low %v4551_v32, %v2013_v34  ;;  %v4588_v0 = vmul.u32.u64.high %v4551_v32, %v2013_v34, %v4587_v59 }
 0x3f1   : > { %v1843_v5 = vor.u32 4788187, %v1842_v50  ;;  %v1846_v49 = vcvt.s32.f32 %v1839_v25  ;;  %v4583_v53 = vmul.u32.u64.low %v4551_v32, %v2017_v61  ;;  %v4584_v33 = vmul.u32.u64.high %v4551_v32, %v2017_v61, %v4583_v53 }
 0x3f2   : > { %v1935_v16 = vclz %v3143_v10  ;;  %v2221_v55 = vsub.f32 %v4355_v56, %v2197_v37  ;;  %v2277_v23 = vmul.f32 %v2264_v58, %v4359_v8  ;;  %v2009_v40 = vsel %vm2003_vm14, %v2006_v51, %v2008_v57 }
 0x3f3   : > { %v1844_v46 = vand.u32 2147483647, %v1843_v5  ;;  %vm1766_vm15 = vcmp.lt.s32.totalorder %v4410_v41, 0  ;;  %vm2027_vm2 = vc.u32 %v4584_v33, %v4587_v59  ;;  %v2028_v56 = vadd.s32 1, %v4588_v0  ;;  %v4623_v18 = vpop.permute.xlu1 %2173 }
 0x3f4   : > { %v3144_v39 = vadd.s32 4294967294, %v1935_v16  ;;  %v2225_v31 = vmul.f32 %v2221_v55, %v2145_v62  ;;  %v2301_v2 = vsub.f32 %v4363_v7, %v2277_v23  ;;  %vm2309_vm3 = vcmask 64512  }
 0x3f5   : > { %v1847_v38 = vmul.f32 %v1846_v49, %v1844_v46  ;;  %vm4605_vm4 = vcmp.le.f32.partialorder %v1764_v52, 0.7853982  ;;  %v1850_v7 = vsub.s32 4, %v4496_v15  ;;  %v2025_v62 = vmul.u32 %v4551_v32, %v2009_v40 }
 0x3f6   : > { %vm3145_vm5 = vcmp.lt.s32.totalorder %v3144_v39, 0  ;;  %v4609_v58 = vmul.f32 %v2301_v2, %v2225_v31  ;;  %v2029_v28 = vsel %vm2027_vm2, %v2028_v56, %v4588_v0  ;;  %v1923_v52 = vadd.s32 %v4514_v27, %v4511_v9 }
 0x3f7   : > { %v1848_v54 = vxor.u32 2147483648, %v1847_v38  ;;  %v1938_v37 = vsel %vm3145_vm5, 0, %v3144_v39  ;;  %v2030_v42 = vadd.s32 %v2029_v28, %v2025_v62  ;;  %v1851_v9 = vsel %vm1766_vm15, %v1850_v7, %v4496_v15 }
 0x3f8   : > { %v1939_v14 = vsub.s32 32, %v1938_v37  ;;  %v1943_v19 = vsub.s32 4294967266, %v1938_v37  ;;  %v2310_v22 = vsel %vm2309_vm3, %v4609_v58, -inf  ;;  %v1940_v32 = vshll.u32 %v1931_v17, %v1938_v37  ;;  %v4633_v17 = vpop.permute.xlu1 %2102 }
 0x3f9   : > { %v1849_v48 = vsel %vm1766_vm15, %v1848_v54, %v1847_v38  ;;  %2311 = vmax.xlane.f32.xlu1 %v2310_v22  ;;  %v2031_v50 = vadd.s32 536870912, %v2030_v42  ;;  %v1853_v34 = vsel %vm4605_vm4, 0, %v1851_v9  ;;  %vm4637_vm6 = vcmp.le.f32.partialorder %v1867_v47, 0.7853982 }
 0x3fa   : > { %v1852_v35 = vsel %vm4605_vm4, %v4410_v41, %v1849_v48  ;;  %v1941_v12 = vshrl.u32 %v1923_v52, %v1939_v14  ;;  %v1944_v25 = vadd.s32 127, %v1943_v19  ;;  %v1857_v61 = vand.u32 3, %v1853_v34  ;;  %v2249_v19 = vpop.permute.xlu0 %2248 }
 0x3fb   : > { %3471 = vcosq.f32 %v1852_v35  ;;  %v4628_v51 = vshrl.u32 %v2031_v50, 30  ;;  %vm1869_vm8 = vcmp.lt.s32.totalorder %v4418_v1, 0  ;;  %v1953_v31 = vsub.s32 4, %v4556_v44 }
 0x3fc   : > { %3473 = vsinq.f32 %v1852_v35  ;;  %v1942_v27 = vor.u32 %v1941_v12, %v1940_v32  ;;  %v1945_v24 = vshll.u32 %v1944_v25, 23  ;;  %v4642_v38 = vpop.permute.xlu1 %2137  ;;  %vm1862_vm9 = vcmp.eq.s32.totalorder %v1857_v61, 2 }
 0x3fd   : > { %v2033_v30 = vshll.u32 %v4628_v51, 30  ;;  %vm1859_vm10 = vcmp.eq.s32.totalorder %v1857_v61, 0  ;;  %vm1858_vm7 = vcmp.lt.s32.totalorder %v1857_v61, 2  ;;  %vm1856_vm11 = vweird.f32 %v4410_v41 }
 0x3fe   : > { %v1946_v57 = vor.u32 4788187, %v1945_v24  ;;  %v1949_v49 = vcvt.s32.f32 %v1942_v27  ;;  %v1954_v62 = vsel %vm1869_vm8, %v1953_v31, %v4556_v44  ;;  %v2026_v41 = vadd.s32 %v4587_v59, %v4584_v33  ;;  %v2289_v61 = vpop.permute.xlu0 %2288 }
 0x3ff   : > { %v2034_v10 = vsub.s32 %v2030_v42, %v2033_v30  ;;  %v1956_v22 = vsel %vm4637_vm6, 0, %v1954_v62  ;;  %vm1959_vm2 = vweird.f32 %v4418_v1  ;;  %vm4677_vm4 = vcmp.le.f32.partialorder %v1970_v60, 0.7853982 }
 0x400   : > { %v1947_v5 = vand.u32 2147483647, %v1946_v57  ;;  %v2214_v35 = vpop.permute.xlu1 %2213  ;;  %v1960_v57 = vand.u32 3, %v1956_v22  ;;  %vm1972_vm5 = vcmp.lt.s32.totalorder %v4430_v43, 0 }
 0x401   : > { %v2036_v0 = vsub.s32 0, %v2034_v10 }
 0x402   : > { %v1950_v53 = vmul.f32 %v1949_v49, %v1947_v5  ;;  %vm1965_vm13 = vcmp.eq.s32.totalorder %v1960_v57, 2  ;;  %vm1962_vm14 = vcmp.eq.s32.totalorder %v1960_v57, 0  ;;  %vm1961_vm15 = vcmp.lt.s32.totalorder %v1960_v57, 2 }
 0x403   : > { %v3147_v23 = vmin.u32 %v2036_v0, %v2034_v10 }
 0x404   : > { %v1951_v15 = vxor.u32 2147483648, %v1950_v53  ;;  %v4665_v33 = vpop.permute.xlu1 %2142 }
 0x405   : > { %v3472_v46 = vpop.eup %3471  ;;  %v2038_v56 = vclz %v3147_v23 }
 0x406   : > { %v3474_v16 = vpop.eup %3473  ;;  %v1863_v40 = vxor.u32 2147483648, %v3472_v46  ;;  %v1952_v39 = vsel %vm1869_vm8, %v1951_v15, %v1950_v53 }
 0x407   : > { %v1860_v2 = vxor.u32 2147483648, %v3474_v16  ;;  %v1955_v47 = vsel %vm4637_vm6, %v4418_v1, %v1952_v39  ;;  %v3148_v7 = vadd.s32 4294967294, %v2038_v56  ;;  %v2056_v1 = vsub.s32 4, %v4628_v51 }
 0x408   : > { %v1864_v8 = vsel %vm1862_vm9, %v1863_v40, %v3474_v16  ;;  %3475 = vcosq.f32 %v1955_v47  ;;  %v2219_v31 = vpop.permute.xlu1 %2218 }
 0x409   : > { %v1861_v54 = vsel %vm1859_vm10, %v3472_v46, %v1860_v2  ;;  %3477 = vsinq.f32 %v1955_v47  ;;  %vm3149_vm12 = vcmp.lt.s32.totalorder %v3148_v7, 0  ;;  %v2057_v22 = vsel %vm1972_vm5, %v2056_v1, %v4628_v51 }
 0x40a   : > { %v1865_v37 = vsel %vm1858_vm7, %v1861_v54, %v1864_v8  ;;  %v2041_v42 = vsel %vm3149_vm12, 0, %v3148_v7  ;;  %vm2062_vm10 = vweird.f32 %v4430_v43  ;;  %vm2671_vm7 = vcmask 130048  }
 0x40b   : > { %v1866_v28 = vsel %vm1856_vm11, nan, %v1865_v37  ;;  %v2042_v32 = vsub.s32 32, %v2041_v42  ;;  %v2046_v12 = vsub.s32 4294967266, %v2041_v42  ;;  %v2043_v9 = vshll.u32 %v2034_v10, %v2041_v42  ;;  %v2254_v37 = vpop.permute.xlu0 %2253 }
 0x40c   : > { %v2112_v48 = vrot.slane %v1866_v28, %v4433_v20  ;;  %v2188_v52 = vrot.slane %v1866_v28, %v4466_v63  ;;  %v2268_v14 = vrot.slane %v1866_v28, %v4469_v26  ;;  %v2294_v42 = vpop.permute.xlu1 %2293  ;;  %vm2673_vm11 = vcmask 195584  }
 0x40d   : > { %v2044_v27 = vshrl.u32 %v2026_v41, %v2042_v32  ;;  %v2047_v24 = vadd.s32 127, %v2046_v12 }
 0x40e   : > { %v2278_v44 = vmul.f32 %v2268_v14, %v2249_v19  ;;  %v2122_v25 = vmul.f32 %v2112_v48, %v4394_v36  ;;  %v2198_v50 = vmul.f32 %v2188_v52, %v4554_v45 }
 0x40f   : > { %v2045_v5 = vor.u32 %v2044_v27, %v2043_v9  ;;  %v2048_v49 = vshll.u32 %v2047_v24, 23  ;;  %v2259_v57 = vpop.permute.xlu0 %2258 }
 0x410   : > { %v2146_v34 = vsub.f32 %v4396_v4, %v2122_v25  ;;  %v2222_v30 = vsub.f32 %v4573_v13, %v2198_v50  ;;  %v2302_v59 = vsub.f32 %v2289_v61, %v2278_v44 }
 0x411   : > { %v2049_v36 = vor.u32 4788187, %v2048_v49  ;;  %v2052_v55 = vcvt.s32.f32 %v2045_v5 }
 0x412   : > { %v3476_v53 = vpop.eup %3475  ;;  %v2226_v0 = vmul.f32 %v2222_v30, %v2146_v34 }
 0x413   : > { %v3478_v46 = vpop.eup %3477  ;;  %v1966_v15 = vxor.u32 2147483648, %v3476_v53  ;;  %v2050_v16 = vand.u32 2147483647, %v2049_v36 }
 0x414   : > { %v1963_v45 = vxor.u32 2147483648, %v3478_v46  ;;  %v4667_v10 = vmul.f32 %v2302_v59, %v2226_v0 }
 0x415   : > { %v1967_v4 = vsel %vm1965_vm13, %v1966_v15, %v3478_v46  ;;  %v2053_v40 = vmul.f32 %v2052_v55, %v2050_v16  ;;  %v2299_v46 = vpop.permute.xlu0 %2298 }
 0x416   : > { %v1964_v13 = vsel %vm1962_vm14, %v3476_v53, %v1963_v45  ;;  %v2313_v23 = vsel %vm2309_vm3, %v4667_v10, -inf }
 0x417   : > { %v1968_v39 = vsel %vm1961_vm15, %v1964_v13, %v1967_v4  ;;  %2314 = vmax.xlane.f32.xlu0 %v2313_v23  ;;  %v2054_v47 = vxor.u32 2147483648, %v2053_v40 }
 0x418   : > { %v1969_v2 = vsel %vm1959_vm2, nan, %v1968_v39 }
 0x419   : > { %v2116_v56 = vrot.slane %v1969_v2, %v4433_v20  ;;  %v2192_v8 = vrot.slane %v1969_v2, %v4466_v63  ;;  %v2272_v54 = vrot.slane %v1969_v2, %v4469_v26  ;;  %v2055_v62 = vsel %vm1972_vm5, %v2054_v47, %v2053_v40 }
 0x41a   : > { %v2058_v14 = vsel %vm4677_vm4, %v4430_v43, %v2055_v62 }
 0x41b   : > { %v2279_v28 = vmul.f32 %v2272_v54, %v2254_v37  ;;  %v2123_v48 = vmul.f32 %v2116_v56, %v4596_v29  ;;  %v2199_v52 = vmul.f32 %v2192_v8, %v4623_v18  ;;  %3479 = vcosq.f32 %v2058_v14 }
 0x41c   : > { %3481 = vsinq.f32 %v2058_v14  ;;  %v2059_v29 = vsel %vm4677_vm4, 0, %v2057_v22 }
 0x41d   : > { %v2147_v60 = vsub.f32 %v4642_v38, %v2123_v48  ;;  %v2223_v19 = vsub.f32 %v2214_v35, %v2199_v52  ;;  %v2303_v41 = vsub.f32 %v2294_v42, %v2279_v28  ;;  %v2063_v44 = vand.u32 3, %v2059_v29 }
 0x41f   : > { %v2227_v32 = vmul.f32 %v2223_v19, %v2147_v60  ;;  %vm2068_vm6 = vcmp.eq.s32.totalorder %v2063_v44, 2  ;;  %vm2065_vm8 = vcmp.eq.s32.totalorder %v2063_v44, 0  ;;  %vm2064_vm9 = vcmp.lt.s32.totalorder %v2063_v44, 2  ;;  %v2676_v44 = vld [vmem:[%s4867_s4 + $0x8] sm:$0xff] }
 0x421   : > { %v2307_v12 = vmul.f32 %v2303_v41, %v2227_v32 }
 0x423   : > { %v2316_v18 = vsel %vm2309_vm3, %v2307_v12, -inf }
 0x424   : > { %2317 = vmax.xlane.f32.xlu0 %v2316_v18  ;;  %v2675_v18 = vld [vmem:[%s4867_s4] sm:$0xff] }
 0x425   : > { %v3480_v25 = vpop.eup %3479 }
 0x426   : > { %v3482_v50 = vpop.eup %3481  ;;  %v2069_v9 = vxor.u32 2147483648, %v3480_v25 }
 0x427   : > { %v2066_v27 = vxor.u32 2147483648, %v3482_v50 }
 0x428   : > { %v2070_v38 = vsel %vm2068_vm6, %v2069_v9, %v3482_v50 }
 0x429   : > { %v2067_v35 = vsel %vm2065_vm8, %v3480_v25, %v2066_v27  ;;  %v3285_v25 = vpack.c.bf16 %v2676_v44, %v2675_v18  ;;  %v2677_v27 = vld [vmem:[%s4867_s4 + $0x10] sm:$0xff] }
 0x42a   : > { %v2071_v51 = vsel %vm2064_vm9, %v2067_v35, %v2070_v38  ;;  %v2678_v38 = vld [vmem:[%s4867_s4 + $0x18] sm:$0xff] }
 0x42b   : > { %v2072_v24 = vsel %vm2062_vm10, nan, %v2071_v51  ;;  %v3288_v35 = vpack.c.bf16 %v2678_v38, %v2677_v27 }
 0x42c   : > { %v2120_v34 = vrot.slane %v2072_v24, %v4433_v20  ;;  %v2196_v30 = vrot.slane %v2072_v24, %v4466_v63  ;;  %v2276_v5 = vrot.slane %v2072_v24, %v4469_v26 }
 0x42e   : > { %v2280_v49 = vmul.f32 %v2276_v5, %v2259_v57  ;;  %v2124_v61 = vmul.f32 %v2120_v34, %v4633_v17  ;;  %v2200_v53 = vmul.f32 %v2196_v30, %v4398_v21 }
 0x430   : > { %v2148_v59 = vsub.f32 %v4665_v33, %v2124_v61  ;;  %v2224_v0 = vsub.f32 %v2219_v31, %v2200_v53  ;;  %v2304_v36 = vsub.f32 %v2299_v46, %v2280_v49 }
 0x432   : > { %v2228_v43 = vmul.f32 %v2224_v0, %v2148_v59  ;;  %v3160_v0 = vld [vmem:[%s4868_s5] ss:$0 sm:$0xff] }
 0x434   : > { %v2308_v15 = vmul.f32 %v2304_v36, %v2228_v43 }
 0x436   : > { %v2319_v45 = vsel %vm2309_vm3, %v2308_v15, -inf }
 0x437   : > { %2320 = vmax.xlane.f32.xlu1 %v2319_v45 }
 0x43a   : > { %2354 = vrot.lane.b32.xlu0 %v3908_v11, %s3637_s21  ;;  %s4920_s21 = sld [smem:[#allocation16_spill]] }
 0x448   : > { %2430 = vrot.lane.b32.xlu1 %v3908_v11, %s3638_s24  ;;  %s494_s24 = scalar_lea.vmem [#allocation7], %s3098_s26 }
 0x486   : > { %v2312_v20 = vpop.xlane.xlu1 %2311 }
 0x487   : > { %v2322_v63 = vsub.f32 %v4609_v58, %v2312_v20 }
 0x489   : > { %v2326_v21 = vmul.f32 1.442695, %v2322_v63 }
 0x48b   : > { %3483 = vpow2.f32 %v2326_v21 }
 0x495   : > { %v3484_v26 = vpop.eup %3483 }
 0x496   : > { %v2334_v17 = vsel %vm2309_vm3, %v3484_v26, 0.0 }
 0x497   : > { %2335 = vadd.xlane.f32.xlu0 %v2334_v17 }
 0x4a4   : > { %v2315_v33 = vpop.xlane.xlu0 %2314 }
 0x4a5   : > { %v2323_v16 = vsub.f32 %v4667_v10, %v2315_v33 }
 0x4a7   : > { %v2328_v55 = vmul.f32 1.442695, %v2323_v16  ;;  %v2791_v16 = vld [vmem:[%s4871_s8 + $0x8] sm:$0xff] }
 0x4a9   : > { %3485 = vpow2.f32 %v2328_v55  ;;  %v2792_v55 = vld [vmem:[%s4871_s8 + $0x10] sm:$0xff] }
 0x4b1   : > { %v2318_v4 = vpop.xlane.xlu0 %2317 }
 0x4b2   : > { %v2324_v13 = vsub.f32 %v2307_v12, %v2318_v4 }
 0x4b3   : > { %v3486_v23 = vpop.eup %3485 }
 0x4b4   : > { %v2330_v40 = vmul.f32 1.442695, %v2324_v13  ;;  %v2337_v39 = vsel %vm2309_vm3, %v3486_v23, 0.0  ;;  %v2793_v13 = vld [vmem:[%s4871_s8 + $0x18] sm:$0xff] }
 0x4b5   : > { %v2355_v31 = vpop.permute.xlu0 %2354  ;;  %2338 = vadd.xlane.f32.xlu1 %v2337_v39  ;;  %v2875_v39 = vld [vmem:[%s4873_s10 + $0x8] sm:$0xff] }
 0x4b6   : > { %3487 = vpow2.f32 %v2330_v40  ;;  %3218 = vmatpush3.msra.mxu1 %v2355_v31  ;;  %v2874_v40 = vld [vmem:[%s4873_s10] sm:$0xff]  ;;  %v2876_v31 = vld [vmem:[%s4873_s10 + $0x10] sm:$0xff] }
 0x4b7   : > { %3222 = vmatprep.subr.mxu1 %v3623_v6 }
 0x4c0   : > { %v3488_v58 = vpop.eup %3487 }
 0x4c1   : > { %v2340_v2 = vsel %vm2309_vm3, %v3488_v58, 0.0 }
 0x4c2   : > { %2341 = vadd.xlane.f32.xlu0 %v2340_v2  ;;  %v2877_v2 = vld [vmem:[%s4873_s10 + $0x18] sm:$0xff] }
 0x4c4   : > { %v2321_v47 = vpop.xlane.xlu1 %2320 }
 0x4c5   : > { %v2325_v10 = vsub.f32 %v2308_v15, %v2321_v47  ;;  %v3503_v15 = vld [vmem:[%s3875_s23] sm:$0xff]  ;;  %v3300_v47 = vpack.c.bf16 %v2877_v2, %v2876_v31  ;;  %s3171_s23 = sshll.u32 %s3741_s17, 7  ;;  %s3644_s17 = smov [#allocation7]  }
 0x4c6   : > { %s4818_s1 = scalar_lea.hbm %s4921_s22, %s3171_s23  ;;  %s3551_s26 = sshll.u32 %s3644_s17, 4  ;;  %s3552_s26 = int_to_ptr.vmem [resolvable:$false] %s3551_s26 }
 0x4c7   : > { %v2332_v56 = vmul.f32 1.442695, %v2325_v10  ;;  %v2878_v10 = vld [vmem:[%s4873_s10 + $0x20] sm:$0xff] }
 0x4c8   : > { %v2431_v62 = vpop.permute.xlu1 %2430 }
 0x4c9   : > { %3489 = vpow2.f32 %v2332_v56  ;;  %v2879_v56 = vld [vmem:[%s4873_s10 + $0x28] sm:$0xff] }
 0x4d3   : > { %v3490_v8 = vpop.eup %3489 }
 0x4d4   : > { %v2343_v54 = vsel %vm2309_vm3, %v3490_v8, 0.0 }
 0x4d5   : > { %2344 = vadd.xlane.f32.xlu1 %v2343_v54 }
 0x4d8   : > { %2582 = vrot.lane.b32.xlu0 %v3908_v11, %s3639_s27  ;;  %s3008_s27 = sshll.u32 %s494_s24, 4  ;;  %s4820_s27 = int_to_ptr.vmem [resolvable:$true] %s3008_s27 }
 0x4d9   : > { %s3547_s25 = scalar_lea.vmem %s4820_s27, 128  ;;  %p3554_p1 = scmp.lt.s32.totalorder %s4820_s27, %s3552_s26 }
 0x4da   : > { %p3548_p8 = scmp.ne.s32.totalorder %s4820_s27, %s3547_s25 }
 0x4dc   : > { %p3549_p11 = pnand %p3548_p8, %p4922_p9 }
 0x4de   : > { %p3550_p5 = pneg %p3549_p11 }
 0x4e6   : > { %2506 = vrot.lane.b32.xlu1 %v3908_v11, %s3640_s14  ;;  %s3642_s14 = smov 16  }
 0x524   : > { %v2336_v7 = vpop.xlane.xlu0 %2335 }
 0x525   : > { %3491 = vrcp.f32 %v2336_v7 }
 0x52f   : > { %v3492_v1 = vpop.eup %3491 }
 0x530   : > { %v2350_v37 = vmul.f32 %v3492_v1, %v3484_v26 }
 0x532   : > { %3220 = vmatmul.mubr.msk.f32.vlgmr.msra.gmra.mrb[0].mxu1 %vm2309_vm3, %v2350_v37 }
 0x533   : > { %3223 = vmatpush3.msra.mxu1 %v2431_v62  ;;  %3224 = vmatprep.mubr.msk.f32.mxu1 %vm3622_vm0, %v3623_v6  ;;  %v3162_v62 = vld [vmem:[%s4869_s6] ss:$0 sm:$0xff] }
 0x534   : > { %3227 = vmatprep.subr.mxu1 %v3623_v6 }
 0x542   : > { %v2339_v28 = vpop.xlane.xlu1 %2338 }
 0x543   : > { %3493 = vrcp.f32 %v2339_v28 }
 0x54d   : > { %v3494_v48 = vpop.eup %3493 }
 0x54e   : > { %v2351_v52 = vmul.f32 %v3494_v48, %v3486_v23  ;;  %v3294_v23 = vpack.c.bf16 %v2793_v13, %v2792_v55  ;;  %v3163_v48 = vld [vmem:[%s4870_s7] ss:$0 sm:$0xff] }
 0x54f   : > { %v2342_v14 = vpop.xlane.xlu0 %2341 }
 0x550   : > { %3225 = vmatmul.mubr.msk.f32.vlgmr.msra.gmra.mrb[2].mxu1 %vm2309_vm3, %v2351_v52  ;;  %3495 = vrcp.f32 %v2342_v14 }
 0x551   : > { %3229 = vmatprep.mubr.msk.f32.mxu1 %vm3622_vm0, %v3623_v6 }
 0x553   : > { %v2583_v11 = vpop.permute.xlu0 %2582 }
 0x554   : > { %3233 = vmatpush3.msra.mxu0 %v2583_v11  ;;  %v2881_v11 = vld [vmem:[%s4873_s10 + $0x38] sm:$0xff] }
 0x555   : > { %3284 = vmatprep.subr.bf16.mxu0 %v3621_v3 }
 0x55a   : > { %v3496_v60 = vpop.eup %3495 }
 0x55b   : > { %v2352_v42 = vmul.f32 %v3496_v60, %v3488_v58  ;;  %v3297_v58 = vpack.c.bf16 %v2875_v39, %v2874_v40 }
 0x562   : > { %v2345_v19 = vpop.xlane.xlu1 %2344 }
 0x563   : > { %3497 = vrcp.f32 %v2345_v19  ;;  %v3164_v19 = vld [vmem:[%s4872_s9] ss:$0 sm:$0xff] }
 0x566   : > { %v2507_v22 = vpop.permute.xlu1 %2506 }
 0x567   : > { %3228 = vmatpush3.msra.mxu1 %v2507_v22 }
 0x568   : > { %3230 = vmatmul.mubr.msk.f32.vlgmr.msra.gmra.mrb[4].mxu1 %vm2309_vm3, %v2352_v42  ;;  %3296 = vmatprep.subr.bf16.mxu1 %v3621_v3 }
 0x569   : > { %3275 = vmatprep.mubr.msk.f32.mxu1 %vm3622_vm0, %v3623_v6  ;;  %3298 = vmatpush3.bf16.msra.mxu1 %v3297_v58 }
 0x56a   : > { %3299 = vmatprep.subr.bf16.mxu1 %v3621_v3 }
 0x56d   : > { %v3498_v41 = vpop.eup %3497  ;;  %3301 = vmatpush3.bf16.msra.mxu1 %v3300_v47 }
 0x56e   : > { %v2353_v32 = vmul.f32 %v3498_v41, %v3490_v8  ;;  %v3303_v8 = vpack.c.bf16 %v2879_v56, %v2878_v10  ;;  %3302 = vmatprep.subr.bf16.mxu1 %v3621_v3 }
 0x570   : > { %3235 = vmatmul.mubr.msk.f32.vlgmr.msra.gmra.mrb[2].mxu0 %vm2309_vm3, %v2353_v32  ;;  %v3166_v32 = vld [vmem:[%s4874_s11] ss:$0 sm:$0xff] }
 0x571   : > { %3245 = vmatprep.mubr.msk.f32.mxu0 %vm3622_vm0, %v3623_v6  ;;  %3286 = vmatpush3.bf16.msra.mxu0 %v3285_v25 }
 0x572   : > { %3287 = vmatprep.subr.bf16.mxu0 %v3621_v3  ;;  %3304 = vmatpush3.bf16.msra.mxu1 %v3303_v8 }
 0x573   : > { %3305 = vmatprep.subr.bf16.mxu1 %v3621_v3 }
 0x575   : > { %3289 = vmatpush3.bf16.msra.mxu0 %v3288_v35 }
 0x576   : > { %3290 = vmatprep.subr.bf16.mxu0 %v3621_v3 }
 0x605   : > { %v2426_v12 = vpop.f32.mrb[0].mxu1 }
 0x606   : > { %v3221_v29 = vpop.f32.mrb[1].mxu1 }
 0x623   : > { %v2502_v50 = vpop.f32.mrb[2].mxu1 }
 0x624   : > { %2659 = vrot.lane.b32.xlu1 %v2502_v50, %s3641_s18  ;;  %v3226_v9 = vpop.f32.mrb[3].mxu1  ;;  %s3553_s18 = scalar_lea.vmem %s3552_s26, 256 }
 0x625   : > { %p3555_p2 = scmp.lt.s32.totalorder %s3553_s18, %s3547_s25 }
 0x627   : > { %p3556_p12 = por %p3555_p2, %p3554_p1 }
 0x629   : > { %p3557_p0 = pnand %p3556_p12, %p3550_p5 }
 0x63b   : > { %v2578_v51 = vpop.f32.mrb[4].mxu1 }
 0x63c   : > { %2663 = vrot.lane.b32.xlu0 %v2578_v51, %s3642_s14  ;;  %v3231_v24 = vpop.f32.mrb[5].mxu1 }
 0x643   : > { %v2654_v57 = vpop.f32.mrb[2].mxu0 }
 0x644   : > { %2667 = vrot.lane.b32.xlu1 %v2654_v57, %s3643_s20  ;;  %v3236_v34 = vpop.f32.mrb[3].mxu0 }
 0x696   : > { %v2660_v30 = vpop.permute.xlu1 %2659 }
 0x697   : > { %v2670_v49 = vsel %vm2309_vm3, %v2426_v12, %v2660_v30  ;;  %v3168_v30 = vld [vmem:[%s4875_s12] ss:$0 sm:$0xff] }
 0x6ae   : > { %v2664_v5 = vpop.permute.xlu0 %2663 }
 0x6af   : > { %v2672_v61 = vsel %vm2671_vm7, %v2670_v49, %v2664_v5  ;;  %v3169_v49 = vld [vmem:[%s4920_s21] ss:$0 sm:$0xff] }
 0x6b6   : > { %v2668_v53 = vpop.permute.xlu1 %2667 }
 0x6b7   : > { %v2674_v59 = vsel %vm2673_vm11, %v2672_v61, %v2668_v53 }
 0x6b8   : > { %3246 = vmatmul.mubr.msk.f32.vlgmr.msra.gmra.mrb[4].mxu0 %vm507_vm1, %v2674_v59 }
 0x6b9   : > { %3256 = vmatprep.mubr.msk.f32.mxu0 %vm3622_vm0, %v3623_v6  ;;  %v2790_v6 = vld [vmem:[%s4871_s8] sm:$0xff]  ;;  %vm2889_vm0 = vcmask 523264  }
 0x6ba   : > { %v3291_v4 = vpack.c.bf16 %v2791_v16, %v2790_v6 }
 0x6bc   : > { %3292 = vmatpush3.bf16.msra.mxu0 %v3291_v4 }
 0x6bd   : > { %3293 = vmatprep.subr.bf16.mxu0 %v3621_v3  ;;  %v2880_v3 = vld [vmem:[%s4873_s10 + $0x30] sm:$0xff] }
 0x6be   : > { %v3306_v60 = vpack.c.bf16 %v2881_v11, %v2880_v3 }
 0x6c0   : > { %3295 = vmatpush3.bf16.msra.mxu0 %v3294_v23  ;;  %3307 = vmatpush3.bf16.msra.mxu1 %v3306_v60 }
 0x78b   : > { %v2755_v46 = vpop.f32.mrb[4].mxu0 }
 0x78c   : > { %v2756_v36 = vadd.f32 %v3160_v0, %v2755_v46  ;;  %v3247_v43 = vpop.f32.mrb[5].mxu0 }
 0x78e   : > { %v2759_v45 = vadd.f32 %v3503_v15, %v2756_v36 }
 0x790   : > { %v2762_v20 = vsel %vm507_vm1, %v2759_v45, 0.0 }
 0x791   : > { %2763 = vadd.xlane.f32.xlu0 %v2762_v20 }
 0x81e   : > { %v2764_v63 = vpop.xlane.xlu0 %2763 }
 0x81f   : > { %v2766_v21 = vmul.f32 0.03125, %v2764_v63 }
 0x821   : > { %v2767_v26 = vsub.f32 %v2759_v45, %v2766_v21 }
 0x823   : > { %v2768_v17 = vmul.f32 %v2767_v26, %v2767_v26 }
 0x825   : > { %v2769_v33 = vsel %vm507_vm1, %v2768_v17, 0.0 }
 0x826   : > { %2770 = vadd.xlane.f32.xlu1 %v2769_v33 }
 0x8b3   : > { %v2771_v54 = vpop.xlane.xlu1 %2770 }
 0x8b4   : > { %v2772_v7 = vmul.f32 0.03125, %v2771_v54 }
 0x8b6   : > { %v2773_v1 = vadd.f32 1e-05, %v2772_v7 }
 0x8b8   : > { %3499 = vrsqrt.f32 %v2773_v1 }
 0x8c2   : > { %v3500_v37 = vpop.eup %3499 }
 0x8c3   : > { %v2775_v28 = vmul.f32 %v3500_v37, %v2767_v26 }
 0x8c5   : > { %v2782_v52 = vmul.f32 %v3162_v62, %v2775_v28 }
 0x8c7   : > { %v2789_v14 = vadd.f32 %v3163_v48, %v2782_v52 }
 0x8c9   : > { %3257 = vmatmul.mubr.msk.f32.vlgmr.msra.gmra.mrb[6].mxu0 %vm507_vm1, %v2789_v14 }
 0x99c   : > { %v2870_v42 = vpop.f32.mrb[6].mxu0 }
 0x99d   : > { %v2871_v22 = vadd.f32 %v3164_v19, %v2870_v42  ;;  %v3258_v41 = vpop.f32.mrb[7].mxu0 }
 0x99f   : > { %3276 = vmatmul.mubr.msk.f32.vlgmr.msra.gmra.mrb[6].mxu1 %vm2889_vm0, %v2871_v22 }
 0xa72   : > { %v2959_v12 = vpop.f32.mrb[6].mxu1 }
 0xa73   : > { %v2960_v29 = vadd.f32 %v3166_v32, %v2959_v12  ;;  %v3277_v18 = vpop.f32.mrb[7].mxu1 }
 0xa75   : > { %v2963_v44 = vadd.f32 %v2960_v29, %v2789_v14 }
 0xa77   : > { %v2966_v25 = vsel %vm507_vm1, %v2963_v44, 0.0 }
 0xa78   : > { %2967 = vadd.xlane.f32.xlu0 %v2966_v25 }
 0xb05   : > { %v2968_v50 = vpop.xlane.xlu0 %2967 }
 0xb06   : > { %v2969_v9 = vmul.f32 0.03125, %v2968_v50 }
 0xb08   : > { %v2970_v27 = vsub.f32 %v2963_v44, %v2969_v9 }
 0xb0a   : > { %v2971_v38 = vmul.f32 %v2970_v27, %v2970_v27 }
 0xb0c   : > { %v2972_v35 = vsel %vm507_vm1, %v2971_v38, 0.0 }
 0xb0d   : > { %2973 = vadd.xlane.f32.xlu0 %v2972_v35 }
 0xb9a   : > { %v2974_v51 = vpop.xlane.xlu0 %2973 }
 0xb9b   : > { %v2975_v24 = vmul.f32 0.03125, %v2974_v51 }
 0xb9d   : > { %v2976_v57 = vadd.f32 1e-05, %v2975_v24 }
 0xb9f   : > { %3501 = vrsqrt.f32 %v2976_v57 }
 0xba9   : > { %v3502_v34 = vpop.eup %3501 }
 0xbaa   : > { %v2978_v5 = vmul.f32 %v3502_v34, %v2970_v27 }
 0xbac   : > { %v2985_v61 = vmul.f32 %v3168_v30, %v2978_v5 }
 0xbae   : > { %v2992_v53 = vadd.f32 %v3169_v49, %v2985_v61 }
 0xbb0   : > { %2993 = vst.msk [vmem:[%s494_s24] sm:$0xff] %vm507_vm1, %v2992_v53 }
 0xbb1   : > { %3560 = shalt.err (!%p3557_p0)
}
 0xbb2   : > { %s3561_s0 = scalar_lea.hbm %s4818_s1, 128  ;;  %s3565_s23 = scalar_lea.hbm %s4921_s22, 256 }
 0xbb3   : > { %p3562_p3 = scmp.ne.s32.totalorder %s4818_s1, %s3561_s0  ;;  %p3566_p6 = scmp.lt.u32.totalorder %s4818_s1, %s4921_s22 }
 0xbb4   : > { %p3567_p13 = scmp.lt.u32.totalorder %s3565_s23, %s3561_s0  ;;  %p3569_p8 = scmp.lt.u32.totalorder %s3561_s0, %s4818_s1 }
 0xbb5   : > { %p3563_p7 = pnand %p3562_p3, %p4922_p9 }
 0xbb6   : > { %p3568_p4 = por %p3567_p13, %p3566_p6 }
 0xbb7   : > { %p3564_p10 = pneg %p3563_p7 }
 0xbb8   : > { %p3570_p11 = por %p3569_p8, %p3568_p4 }
 0xbba   : > { %p3571_p5 = pnand %p3570_p11, %p3564_p10 }
 0xbbc   : > { %3574 = shalt.err (!%p3571_p5)
}
 0xbbd   : > { %3346 = dma.vmem_to_hbm [thread:$0]  (%p4922_p9), %s4820_s27, 128, %s4818_s1, %s2995_s19  }
 0xbbe PF: > { %s4923_s20 = sld [smem:[#allocation11_spill]]  ;;  %s4924_s25 = sld [smem:[#allocation12_spill]] }
 0xbbf   : > { %p4926_p2 = scmp.ge.s32.totalorder %s3617_s16, 2 }
 0xbc4   : > { %s3020_s17 = sand.u32 1, %s4923_s20   ;;  %p4925_p1 = scmp.ne.s32.totalorder %s4924_s25, 0 }
 0xbc5   : > { %s3021_s26 = scalar_lea.sflag [#allocation4], %s3020_s17 }
 0xbc6   : > { %p3357_p12 = pnand %p4926_p2, %p4925_p1 }
 0xbc8   : > { %3600 = dma.done.wait (!%p3357_p12), %s3021_s26, 128  }
 0xbc9   : > { %3602 = vsyncadd (!%p3357_p12), %s3021_s26, 4294967168  ;;  %s4927_s16 = sld [smem:[#allocation13_spill]]  ;;  %s4928_s18 = smov %s3806_s29 }
 0xbca   : > { %s4929_s29 = smov %s3609_s30  ;;  %s4930_s30 = smov %s3613_s15 }
 0xbcb   : > { %s4931_s15 = smov %s4928_s18 }
 0xbcf   : > { %p28_p0 = scmp.ge.s32.totalorder %s4927_s16, 4  }
 0xbd1   :  { %30 = sbr.rel (!%p28_p0) target bundleno = 11 (0xb), region = 126 }
 0xbd8   :  { %3026 = vsyncpa [#allocation3], 1 }
 0xbd9   :  { %3028 = vsyncpa [#allocation3 + $0x1], 1 }
 0xbda   :  { %3029 = vsyncpa [#allocation4], 1 }
 0xbdb   :  { %3031 = vsyncpa [#allocation4 + $0x1], 1 }
 0xbdc   :  { %3032 = vsyncpa [#allocation5], 1 }
 0xbdd   :  { %3034 = vsyncpa [#allocation5 + $0x1], 1 }

</bundles_post_ra>
